<compile_context>
chip_gen: v5e
topology: v5e:2x2
jax: 0.10.0
libtpu: 0.0.40
codegen_flags: <defaults>
</compile_context>

<pallas_src>
import jax
import jax.numpy as jnp
from jax import lax
from jax.experimental import pallas as pl
from jax.experimental.pallas import tpu as pltpu

INPUT_SIZE = 32
DIMS = [INPUT_SIZE, 100, 50, 25, 10, 1]


def _round_up(n, m):
    return ((n + m - 1) // m) * m


def _mlp_kernel(x_ref,
                w1_ref, b1_ref,
                w2_ref, b2_ref,
                w3_ref, b3_ref,
                w4_ref, b4_ref,
                w5_ref, b5_ref,
                o_ref):
    # x tile: [TB, IN] f32 (batch on sublanes). Cast to bf16 for the MXU and
    # contract the feature axis of BOTH operands so the result lands with
    # batch on the lane axis: h1 = W1 @ x^T -> [100, TB].
    xb = x_ref[...].astype(jnp.bfloat16)
    h = lax.dot_general(w1_ref[...], xb, (((1,), (1,)), ((), ())),
                        preferred_element_type=jnp.float32)          # [100, TB]
    h = jnp.maximum(h + b1_ref[...], 0.0)

    h = jnp.dot(w2_ref[...], h.astype(jnp.bfloat16),
                preferred_element_type=jnp.float32)                  # [50, TB]
    h = jnp.maximum(h + b2_ref[...], 0.0)

    h = jnp.dot(w3_ref[...], h.astype(jnp.bfloat16),
                preferred_element_type=jnp.float32)                  # [25, TB]
    h = jnp.maximum(h + b3_ref[...], 0.0)

    h = jnp.dot(w4_ref[...], h.astype(jnp.bfloat16),
                preferred_element_type=jnp.float32)                  # [10, TB]
    h = jax.nn.sigmoid(h + b4_ref[...])                              # f32, EUP

    # Final 10 -> 1 layer on VPU/XLU: mul + sublane reduce (MXU N=1 is wasted).
    y = jnp.sum(w5_ref[...] * h, axis=0, keepdims=True) + b5_ref[...]  # [1, TB]

    # Trailing F.relu from forward(); lane-dense [1, TB] store.
    o_ref[...] = jnp.maximum(y, 0.0).astype(o_ref.dtype)


def _choose_batch_tile(B, block_b):
    """Pick the batch tile: as large as possible (step-overhead bound kernel)
    but always >= 2 grid steps when B > 128 so v7x's 2 TensorCores both work."""
    if B <= 128:
        return 128
    tb = _round_up(pl.cdiv(B, 2), 128)
    return max(128, min(block_b, tb))


def net_forward(x, params, block_b=4096):
    """x: [B, INPUT_SIZE] f32.  params: [(W1..W4 [out,in] bf16, b [out,1] f32),
    (W5 [10,1] f32, b5 [1,1] f32)].  Returns [B, 1] f32."""
    B, F = x.shape
    assert F == INPUT_SIZE
    assert block_b % 128 == 0

    tb = _choose_batch_tile(B, block_b)
    num_tiles = pl.cdiv(B, tb)

    flat = []
    in_specs = [pl.BlockSpec((tb, INPUT_SIZE), lambda i: (i, 0))]
    for w, b in params:
        flat += [w, b]
        # Constant index_maps -> weights/biases stay resident in VMEM across
        # the whole grid (no per-step refetch).
        in_specs.append(pl.BlockSpec(w.shape, lambda i: (0, 0)))
        in_specs.append(pl.BlockSpec(b.shape, lambda i: (0, 0)))

    param_bytes = sum(int(a.size) * a.dtype.itemsize for a in flat)
    cost = pl.CostEstimate(
        flops=2 * 9710 * B,                                   # sum of layer matmuls
        transcendentals=10 * B,                               # sigmoid
        bytes_accessed=B * (INPUT_SIZE * 4 + 4) + param_bytes,
    )

    # No wrapper-side padding: out_shape is the true (1, B); the ragged last
    # tile is handled by Pallas boundary-block masking (per-lane compute never
    # mixes batch lanes, so garbage pad lanes stay confined and are masked on
    # store).
    out = pl.pallas_call(
        _mlp_kernel,
        out_shape=jax.ShapeDtypeStruct((1, B), jnp.float32),
        grid=(num_tiles,),
        in_specs=in_specs,
        out_specs=pl.BlockSpec((1, tb), lambda i: (0, i)),
        compiler_params=pltpu.CompilerParams(
            dimension_semantics=("parallel",)),
        cost_estimate=cost,
    )(x, *flat)

    return out.T  # [B, 1]


def init_params(key):
    """Deterministic init mimicking torch.nn.Linear's uniform(-1/sqrt(in), 1/sqrt(in)).

    Layers 1-4: W stored [out, in] bf16 (MXU operands), b stored [out, 1] f32.
    Layer 5:    W stored [in, 1]  f32  (VPU path),       b stored [1, 1]  f32.
    """
    params = []
    for i in range(len(DIMS) - 1):
        fan_in, fan_out = DIMS[i], DIMS[i + 1]
        key, kw, kb = jax.random.split(key, 3)
        bound = 1.0 / (fan_in ** 0.5)
        w = jax.random.uniform(kw, (fan_out, fan_in), jnp.float32, -bound, bound)
        b = jax.random.uniform(kb, (fan_out, 1), jnp.float32, -bound, bound)
        if i < 4:
            w = w.astype(jnp.bfloat16)
        else:
            w = w.T  # [10, 1] f32 for the VPU final layer
        params.append((w, b))
    return params


def reference_forward(x, params):
    """Pure-JAX reference with the same bf16-at-dot / f32-accumulate math."""
    (w1, b1), (w2, b2), (w3, b3), (w4, b4), (w5, b5) = params
    xb = x.astype(jnp.bfloat16)
    h = lax.dot_general(w1, xb, (((1,), (1,)), ((), ())),
                        preferred_element_type=jnp.float32) + b1
    h = jnp.maximum(h, 0.0)
    h = jnp.dot(w2, h.astype(jnp.bfloat16), preferred_element_type=jnp.float32) + b2
    h = jnp.maximum(h, 0.0)
    h = jnp.dot(w3, h.astype(jnp.bfloat16), preferred_element_type=jnp.float32) + b3
    h = jnp.maximum(h, 0.0)
    h = jnp.dot(w4, h.astype(jnp.bfloat16), preferred_element_type=jnp.float32) + b4
    h = jax.nn.sigmoid(h)
    y = jnp.sum(w5 * h, axis=0, keepdims=True) + b5
    return jnp.maximum(y, 0.0).T  # [B, 1]


if __name__ == "__main__":
    key = jax.random.PRNGKey(0)
    key, kx = jax.random.split(key)
    B = 600  # not a multiple of 128 -> exercises >=2 grid steps + ragged tail block
    x = jax.random.normal(kx, (B, INPUT_SIZE), jnp.float32)
    params = init_params(key)

    out = jax.block_until_ready(net_forward(x, params))

    ref = reference_forward(x, params)
    assert out.shape == (B, 1)
    assert jnp.allclose(out, ref, atol=1e-4, rtol=1e-4), "mismatch vs reference"
    print("KERNEL_OK")
</pallas_src>

<mosaic_0001>
module attributes {stable_mosaic.version = 11 : i64} {
  func.func @_mlp_kernel(%arg0: i32, %arg1: memref<384x32xf32, #tpu.memory_space<vmem>>, %arg2: memref<100x32xbf16, #tpu.memory_space<vmem>>, %arg3: memref<100x1xf32, #tpu.memory_space<vmem>>, %arg4: memref<50x100xbf16, #tpu.memory_space<vmem>>, %arg5: memref<50x1xf32, #tpu.memory_space<vmem>>, %arg6: memref<25x50xbf16, #tpu.memory_space<vmem>>, %arg7: memref<25x1xf32, #tpu.memory_space<vmem>>, %arg8: memref<10x25xbf16, #tpu.memory_space<vmem>>, %arg9: memref<10x1xf32, #tpu.memory_space<vmem>>, %arg10: memref<10x1xf32, #tpu.memory_space<vmem>>, %arg11: memref<1x1xf32, #tpu.memory_space<vmem>>, %arg12: memref<1x384xf32, #tpu.memory_space<vmem>>) attributes {dimension_semantics = [#tpu.dimension_semantics<parallel>], iteration_bounds = array<i64: 2>, scalar_prefetch = 0 : i64, scratch_operands = 0 : i64, tpu.core_type = #tpu.core_type<tc>, window_params = [{transform_indices = @transform_0, window_bounds = array<i64: 384, 32>}, {pipeline_mode = #tpu.pipeline_mode<synchronous>, transform_indices = @transform_1, window_bounds = array<i64: 100, 32>}, {pipeline_mode = #tpu.pipeline_mode<synchronous>, transform_indices = @transform_2, window_bounds = array<i64: 100, 1>}, {pipeline_mode = #tpu.pipeline_mode<synchronous>, transform_indices = @transform_3, window_bounds = array<i64: 50, 100>}, {pipeline_mode = #tpu.pipeline_mode<synchronous>, transform_indices = @transform_4, window_bounds = array<i64: 50, 1>}, {pipeline_mode = #tpu.pipeline_mode<synchronous>, transform_indices = @transform_5, window_bounds = array<i64: 25, 50>}, {pipeline_mode = #tpu.pipeline_mode<synchronous>, transform_indices = @transform_6, window_bounds = array<i64: 25, 1>}, {pipeline_mode = #tpu.pipeline_mode<synchronous>, transform_indices = @transform_7, window_bounds = array<i64: 10, 25>}, {pipeline_mode = #tpu.pipeline_mode<synchronous>, transform_indices = @transform_8, window_bounds = array<i64: 10, 1>}, {pipeline_mode = #tpu.pipeline_mode<synchronous>, transform_indices = @transform_9, window_bounds = array<i64: 10, 1>}, {pipeline_mode = #tpu.pipeline_mode<synchronous>, transform_indices = @transform_10, window_bounds = array<i64: 1, 1>}, {transform_indices = @transform_11, window_bounds = array<i64: 1, 384>}]} {
    %c0 = arith.constant 0 : index
    %c0_0 = arith.constant 0 : index
    %0 = vector.load %arg1[%c0, %c0_0] : memref<384x32xf32, #tpu.memory_space<vmem>>, vector<384x32xf32>
    %1 = arith.truncf %0 : vector<384x32xf32> to vector<384x32xbf16>
    %c0_1 = arith.constant 0 : index
    %c0_2 = arith.constant 0 : index
    %2 = vector.load %arg2[%c0_1, %c0_2] : memref<100x32xbf16, #tpu.memory_space<vmem>>, vector<100x32xbf16>
    %cst = arith.constant dense<0.000000e+00> : vector<100x384xf32>
    %3 = tpu.matmul %2, %1, %cst {dimension_numbers = #tpu.dot_dimension_numbers<[1], [1], [0], [0], [0, 0, 1, 0], [], []>} : vector<100x32xbf16>, vector<384x32xbf16>, vector<100x384xf32> -> vector<100x384xf32>
    %c0_3 = arith.constant 0 : index
    %c0_4 = arith.constant 0 : index
    %4 = vector.load %arg3[%c0_3, %c0_4] : memref<100x1xf32, #tpu.memory_space<vmem>>, vector<100x1xf32>
    %5 = vector.broadcast %4 : vector<100x1xf32> to vector<100x384xf32>
    %6 = arith.addf %3, %5 : vector<100x384xf32>
    %cst_5 = arith.constant 0.000000e+00 : f32
    %7 = vector.broadcast %cst_5 : f32 to vector<100x384xf32>
    %8 = arith.maximumf %6, %7 : vector<100x384xf32>
    %c0_6 = arith.constant 0 : index
    %c0_7 = arith.constant 0 : index
    %9 = vector.load %arg4[%c0_6, %c0_7] : memref<50x100xbf16, #tpu.memory_space<vmem>>, vector<50x100xbf16>
    %10 = arith.truncf %8 : vector<100x384xf32> to vector<100x384xbf16>
    %cst_8 = arith.constant dense<0.000000e+00> : vector<50x384xf32>
    %11 = tpu.matmul %9, %10, %cst_8 {dimension_numbers = #tpu.dot_dimension_numbers<[1], [0], [0], [1], [0, 0, 1, 1], [], []>} : vector<50x100xbf16>, vector<100x384xbf16>, vector<50x384xf32> -> vector<50x384xf32>
    %c0_9 = arith.constant 0 : index
    %c0_10 = arith.constant 0 : index
    %12 = vector.load %arg5[%c0_9, %c0_10] : memref<50x1xf32, #tpu.memory_space<vmem>>, vector<50x1xf32>
    %13 = vector.broadcast %12 : vector<50x1xf32> to vector<50x384xf32>
    %14 = arith.addf %11, %13 : vector<50x384xf32>
    %cst_11 = arith.constant 0.000000e+00 : f32
    %15 = vector.broadcast %cst_11 : f32 to vector<50x384xf32>
    %16 = arith.maximumf %14, %15 : vector<50x384xf32>
    %c0_12 = arith.constant 0 : index
    %c0_13 = arith.constant 0 : index
    %17 = vector.load %arg6[%c0_12, %c0_13] : memref<25x50xbf16, #tpu.memory_space<vmem>>, vector<25x50xbf16>
    %18 = arith.truncf %16 : vector<50x384xf32> to vector<50x384xbf16>
    %cst_14 = arith.constant dense<0.000000e+00> : vector<25x384xf32>
    %19 = tpu.matmul %17, %18, %cst_14 {dimension_numbers = #tpu.dot_dimension_numbers<[1], [0], [0], [1], [0, 0, 1, 1], [], []>} : vector<25x50xbf16>, vector<50x384xbf16>, vector<25x384xf32> -> vector<25x384xf32>
    %c0_15 = arith.constant 0 : index
    %c0_16 = arith.constant 0 : index
    %20 = vector.load %arg7[%c0_15, %c0_16] : memref<25x1xf32, #tpu.memory_space<vmem>>, vector<25x1xf32>
    %21 = vector.broadcast %20 : vector<25x1xf32> to vector<25x384xf32>
    %22 = arith.addf %19, %21 : vector<25x384xf32>
    %cst_17 = arith.constant 0.000000e+00 : f32
    %23 = vector.broadcast %cst_17 : f32 to vector<25x384xf32>
    %24 = arith.maximumf %22, %23 : vector<25x384xf32>
    %c0_18 = arith.constant 0 : index
    %c0_19 = arith.constant 0 : index
    %25 = vector.load %arg8[%c0_18, %c0_19] : memref<10x25xbf16, #tpu.memory_space<vmem>>, vector<10x25xbf16>
    %26 = arith.truncf %24 : vector<25x384xf32> to vector<25x384xbf16>
    %cst_20 = arith.constant dense<0.000000e+00> : vector<10x384xf32>
    %27 = tpu.matmul %25, %26, %cst_20 {dimension_numbers = #tpu.dot_dimension_numbers<[1], [0], [0], [1], [0, 0, 1, 1], [], []>} : vector<10x25xbf16>, vector<25x384xbf16>, vector<10x384xf32> -> vector<10x384xf32>
    %c0_21 = arith.constant 0 : index
    %c0_22 = arith.constant 0 : index
    %28 = vector.load %arg9[%c0_21, %c0_22] : memref<10x1xf32, #tpu.memory_space<vmem>>, vector<10x1xf32>
    %29 = vector.broadcast %28 : vector<10x1xf32> to vector<10x384xf32>
    %30 = arith.addf %27, %29 : vector<10x384xf32>
    %31 = arith.negf %30 : vector<10x384xf32>
    %32 = math.exp %31 : vector<10x384xf32>
    %cst_23 = arith.constant 1.000000e+00 : f32
    %33 = vector.broadcast %cst_23 : f32 to vector<10x384xf32>
    %34 = arith.addf %33, %32 : vector<10x384xf32>
    %35 = arith.divf %33, %34 : vector<10x384xf32>
    %c0_24 = arith.constant 0 : index
    %c0_25 = arith.constant 0 : index
    %36 = vector.load %arg10[%c0_24, %c0_25] : memref<10x1xf32, #tpu.memory_space<vmem>>, vector<10x1xf32>
    %37 = vector.broadcast %36 : vector<10x1xf32> to vector<10x384xf32>
    %38 = arith.mulf %37, %35 : vector<10x384xf32>
    %cst_26 = arith.constant dense<0.000000e+00> : vector<384xf32>
    %39 = vector.multi_reduction <add>, %38, %cst_26 [0] : vector<10x384xf32> to vector<384xf32>
    %40 = vector.shape_cast %39 : vector<384xf32> to vector<1x384xf32>
    %c0_27 = arith.constant 0 : index
    %c0_28 = arith.constant 0 : index
    %41 = vector.load %arg11[%c0_27, %c0_28] : memref<1x1xf32, #tpu.memory_space<vmem>>, vector<1x1xf32>
    %42 = vector.broadcast %41 : vector<1x1xf32> to vector<1x384xf32>
    %43 = arith.addf %40, %42 : vector<1x384xf32>
    %cst_29 = arith.constant 0.000000e+00 : f32
    %44 = vector.broadcast %cst_29 : f32 to vector<1x384xf32>
    %45 = arith.maximumf %43, %44 : vector<1x384xf32>
    %c0_30 = arith.constant 0 : index
    %c0_31 = arith.constant 0 : index
    %46 = vector.load %arg12[%c0_30, %c0_31] : memref<1x384xf32, #tpu.memory_space<vmem>>, vector<1x384xf32>
    tpu.vector_store %arg12[%c0_30, %c0_31], %45 {strides = array<i32>} : memref<1x384xf32, #tpu.memory_space<vmem>>, vector<1x384xf32>,
    return
  }
  func.func @transform_0(%arg0: i32) -> (i32, i32) {
    %c0_i32 = arith.constant 0 : i32
    %c0_i32_0 = arith.constant 0 : i32
    return %arg0, %c0_i32 : i32, i32
  }
  func.func @transform_1(%arg0: i32) -> (i32, i32) {
    %c0_i32 = arith.constant 0 : i32
    %c0_i32_0 = arith.constant 0 : i32
    %c0_i32_1 = arith.constant 0 : i32
    return %c0_i32, %c0_i32_0 : i32, i32
  }
  func.func @transform_2(%arg0: i32) -> (i32, i32) {
    %c0_i32 = arith.constant 0 : i32
    %c0_i32_0 = arith.constant 0 : i32
    %c0_i32_1 = arith.constant 0 : i32
    return %c0_i32, %c0_i32_0 : i32, i32
  }
  func.func @transform_3(%arg0: i32) -> (i32, i32) {
    %c0_i32 = arith.constant 0 : i32
    %c0_i32_0 = arith.constant 0 : i32
    %c0_i32_1 = arith.constant 0 : i32
    return %c0_i32, %c0_i32_0 : i32, i32
  }
  func.func @transform_4(%arg0: i32) -> (i32, i32) {
    %c0_i32 = arith.constant 0 : i32
    %c0_i32_0 = arith.constant 0 : i32
    %c0_i32_1 = arith.constant 0 : i32
    return %c0_i32, %c0_i32_0 : i32, i32
  }
  func.func @transform_5(%arg0: i32) -> (i32, i32) {
    %c0_i32 = arith.constant 0 : i32
    %c0_i32_0 = arith.constant 0 : i32
    %c0_i32_1 = arith.constant 0 : i32
    return %c0_i32, %c0_i32_0 : i32, i32
  }
  func.func @transform_6(%arg0: i32) -> (i32, i32) {
    %c0_i32 = arith.constant 0 : i32
    %c0_i32_0 = arith.constant 0 : i32
    %c0_i32_1 = arith.constant 0 : i32
    return %c0_i32, %c0_i32_0 : i32, i32
  }
  func.func @transform_7(%arg0: i32) -> (i32, i32) {
    %c0_i32 = arith.constant 0 : i32
    %c0_i32_0 = arith.constant 0 : i32
    %c0_i32_1 = arith.constant 0 : i32
    return %c0_i32, %c0_i32_0 : i32, i32
  }
  func.func @transform_8(%arg0: i32) -> (i32, i32) {
    %c0_i32 = arith.constant 0 : i32
    %c0_i32_0 = arith.constant 0 : i32
    %c0_i32_1 = arith.constant 0 : i32
    return %c0_i32, %c0_i32_0 : i32, i32
  }
  func.func @transform_9(%arg0: i32) -> (i32, i32) {
    %c0_i32 = arith.constant 0 : i32
    %c0_i32_0 = arith.constant 0 : i32
    %c0_i32_1 = arith.constant 0 : i32
    return %c0_i32, %c0_i32_0 : i32, i32
  }
  func.func @transform_10(%arg0: i32) -> (i32, i32) {
    %c0_i32 = arith.constant 0 : i32
    %c0_i32_0 = arith.constant 0 : i32
    %c0_i32_1 = arith.constant 0 : i32
    return %c0_i32, %c0_i32_0 : i32, i32
  }
  func.func @transform_11(%arg0: i32) -> (i32, i32) {
    %c0_i32 = arith.constant 0 : i32
    %c0_i32_0 = arith.constant 0 : i32
    return %c0_i32, %arg0 : i32, i32
  }
}

</mosaic_0001>

<bundles_post_ra>
// kernel: tpu_custom_call.1
= control target key start
LH: loop header
LB: loop body
LE: loop exit
PB: predicated region body
PF: predicated region fallthrough
CT: control target
= control target key end

     0   :  { %s2444_s0 = inlined_call_operand.vmem [shape: f32[600,32], index: 0, kind: input, shape index: {}]   ;;  %s2445_s1 = inlined_call_operand.vmem [shape: bf16[100,32], index: 1, kind: input, shape index: {}]   ;;  %s2446_s2 = inlined_call_operand.vmem [shape: f32[100,1], index: 2, kind: input, shape index: {}]   ;;  %s2447_s3 = inlined_call_operand.vmem [shape: bf16[50,100], index: 3, kind: input, shape index: {}]   ;;  %s2448_s4 = inlined_call_operand.vmem [shape: f32[50,1], index: 4, kind: input, shape index: {}]   ;;  %s2449_s5 = inlined_call_operand.vmem [shape: bf16[25,50], index: 5, kind: input, shape index: {}]   ;;  %s2450_s6 = inlined_call_operand.vmem [shape: f32[25,1], index: 6, kind: input, shape index: {}]   ;;  %s2451_s7 = inlined_call_operand.vmem [shape: bf16[10,25], index: 7, kind: input, shape index: {}]   ;;  %s2452_s8 = inlined_call_operand.vmem [shape: f32[10,1], index: 8, kind: input, shape index: {}]   ;;  %s2453_s9 = inlined_call_operand.vmem [shape: f32[10,1], index: 9, kind: input, shape index: {}]   ;;  %s2454_s10 = inlined_call_operand.<no memory space> [shape: f32[1,1], index: 10, kind: input, shape index: {}]   ;;  %s2455_s11 = inlined_call_operand.hbm [shape: f32[1,600], index: 11, kind: output, shape index: {}]  }
   0x1   :  { %2459 = sst [smem:[#allocation7_spill]] %s2444_s0  ;;  %v16_v0 = vstv %s2454_s10 }
   0x2   :  { %17 = vst [vmem:[#allocation2] sm:$0x1] %v16_v0 }
   0x3   :  { %18 = vsyncpa [#allocation4], 0 }
   0x4   :  { %20 = vsyncpa [#allocation4 + $0x1], 0  ;;  %s1895_s19 = smov 0   ;;  %s1897_s20 = smov 0  }
   0x5   :  { %s1899_s21 = smov 0   ;;  %s1901_s22 = smov 0  }
   0x6 LB: > { %s1916_s10 = sadd.s32 4294967295, %s1827_s22   ;;  %s1570_s23 = sadd.s32 4294967294, %s1827_s22   ;;  %s1827_s22 = sphi %s1901_s22, %s2476_s22   ;;  %s1823_s21 = sphi %s1899_s21, %s2475_s21   ;;  %s1819_s20 = sphi %s1897_s20, %s2474_s20   ;;  %s1815_s19 = sphi %s1895_s19, %s2473_s19  }
   0x7   : > { %s1920_s24 = sadd.s32 1, %s1827_s22   ;;  %s269_s25 = sadd.s32 1, %s1823_s21 }
   0x8   : > { %s266_s26 = ssub.s32 %s1827_s22, %s1920_s24  ;;  %p279_p0 = scmp.ne.s32.totalorder %s1823_s21, %s1819_s20 }
   0x9   : > { %p267_p1 = scmp.eq.s32.totalorder %s266_s26, 0  ;;  %p280_p2 = scmp.eq.s32.totalorder %s1916_s10, 1 }
   0xa   : > { %p285_p3 = scmp.ne.s32.totalorder %s1819_s20, %s1815_s19  ;;  %p286_p4 = scmp.eq.s32.totalorder %s1570_s23, 1 }
   0xb   : > { %s1931_s27 = scalar_select %p267_p1, %s1823_s21, %s269_s25  }
   0xc   : > { %p1933_p5 = por %p280_p2, %p279_p0  ;;  %p1937_p6 = por %p286_p4, %p285_p3 }
   0xd   : > { %p1573_p7 = scmp.ge.s32.totalorder %s1827_s22, 1  ;;  %p351_p8 = scmp.lt.s32.totalorder %s1827_s22, 3 }
   0xf   : > { %p352_p9 = pnand %p1573_p7, %p351_p8 }
  0x10   : > { %s395_s30 = smul.u32 (!%p352_p9), 48, %s1916_s10  ;;  %s2462_s0 = sld [smem:[#allocation7_spill]] (!%p352_p9) }
  0x11   : > { %355 = sbr.rel (%p352_p9) target bundleno = 1085 (0x43d), region = 64  ;;  %s392_s17 = sand.u32 (!%p352_p9), 1, %s1819_s20  }
  0x12   : > { %p400_p10 = scmp.lt.s32.totalorder (!%p352_p9), %s395_s30, 74  ;;  %s1686_s18 = smul.u32 (!%p352_p9), 3, %s392_s17 }
  0x13   : > { %s2389_s25 = scalar_lea.sflag (!%p352_p9), [#allocation4], %s392_s17 }
  0x14   : > { %s394_s23 = scalar_lea.vmem (!%p352_p9), [#allocation3], %s1686_s18 }
  0x16   : > { %s2478_s30 = smov (!%p400_p10, %s395_s30), 74  ;;  %vm610_vm0 = vcmask 261120   ;;  %v511_v44 = vld [vmem:[%s2446_s2 + $0x60] sm:$0xf]  ;;  %v1829_v47 = vmov 0   ;;  %v509_v58 = vld [vmem:[%s2446_s2 + $0x50] sm:$0xff] }
  0x17   : > { %s1574_s12 = sshll.u32 %s2478_s30, 3  ;;  %1727 = vset.pattern.permute.xlu0 %v1829_v47  ;;  %1729 = vset.pattern.permute.xlu2 %v1829_v47  ;;  %vm973_vm1 = vcmask 1041408   ;;  %vm960_vm2 = vcmask 818176   ;;  %vm1145_vm3 = vcmask 1040384   ;;  %vm1138_vm4 = vcmask 408576  }
  0x18   : > { %s1947_s15 = scalar_lea.vmem %s2462_s0, %s1574_s12  ;;  %574 = vperm.xlu0 %1727, %v511_v44   ;;  %1728 = vset.pattern.permute.xlu1 %v1829_v47  ;;  %v503_v44 = vld [vmem:[%s2446_s2 + $0x20] sm:$0xff]  ;;  %vm1253_vm5 = vcmask 1043456   ;;  %vm1254_vm6 = vcmask 1044480   ;;  %vm1249_vm7 = vcmask 203776  }
  0x19   : > { %v428_v1 = vld [vmem:[%s1947_s15 + $0x70] sm:$0xff]  ;;  %v429_v2 = vld [vmem:[%s1947_s15 + $0x78] sm:$0xff]  ;;  %v426_v10 = vld [vmem:[%s1947_s15 + $0x60] sm:$0xff] }
  0x1a   : > { %v444_v3 = vld [vmem:[%s1947_s15 + $0xf0] sm:$0xff]  ;;  %v469_v4 = vpack.c.bf16 %v429_v2, %v428_v1  ;;  %v445_v5 = vld [vmem:[%s1947_s15 + $0xf8] sm:$0xff]  ;;  %v427_v11 = vld [vmem:[%s1947_s15 + $0x68] sm:$0xff] }
  0x1b   : > { %v460_v6 = vld [vmem:[%s1947_s15 + $0x170] sm:$0xff]  ;;  %v461_v7 = vld [vmem:[%s1947_s15 + $0x178] sm:$0xff]  ;;  %v477_v8 = vpack.c.bf16 %v445_v5, %v444_v3  ;;  %v442_v12 = vld [vmem:[%s1947_s15 + $0xe0] sm:$0xff]  ;;  %v468_v19 = vpack.c.bf16 %v427_v11, %v426_v10 }
  0x1c   : > { %v485_v9 = vpack.c.bf16 %v461_v7, %v460_v6  ;;  %v654_v13 = vsel %vm610_vm0, %v469_v4, 0  ;;  %v443_v14 = vld [vmem:[%s1947_s15 + $0xe8] sm:$0xff]  ;;  %v458_v15 = vld [vmem:[%s1947_s15 + $0x160] sm:$0xff]  ;;  %v424_v25 = vld [vmem:[%s1947_s15 + $0x50] sm:$0xff] }
  0x1d   : > { %v459_v16 = vld [vmem:[%s1947_s15 + $0x168] sm:$0xff]  ;;  %704 = vmatpush.bf16.xpose.msra.mxu0 %v654_v13  ;;  %v678_v17 = vsel %vm610_vm0, %v477_v8, 0  ;;  %v476_v20 = vpack.c.bf16 %v443_v14, %v442_v12  ;;  %v651_v22 = vsel %vm610_vm0, %v468_v19, 0  ;;  %v425_v26 = vld [vmem:[%s1947_s15 + $0x58] sm:$0xff]  ;;  %v440_v27 = vld [vmem:[%s1947_s15 + $0xd0] sm:$0xff] }
  0x1e   : > { %v702_v18 = vsel %vm610_vm0, %v485_v9, 0  ;;  %747 = vmatpush.bf16.xpose.msra.mxu1 %v678_v17  ;;  %v484_v21 = vpack.c.bf16 %v459_v16, %v458_v15  ;;  %v441_v28 = vld [vmem:[%s1947_s15 + $0xd8] sm:$0xff]  ;;  %v456_v29 = vld [vmem:[%s1947_s15 + $0x150] sm:$0xff]  ;;  %v467_v31 = vpack.c.bf16 %v425_v26, %v424_v25  ;;  %v422_v37 = vld [vmem:[%s1947_s15 + $0x40] sm:$0xff] }
  0x1f   : > { %790 = vmatpush.bf16.xpose.msra.mxu2 %v702_v18  ;;  %v675_v23 = vsel %vm610_vm0, %v476_v20, 0  ;;  %v457_v30 = vld [vmem:[%s1947_s15 + $0x158] sm:$0xff]  ;;  %v475_v32 = vpack.c.bf16 %v441_v28, %v440_v27  ;;  %v423_v38 = vld [vmem:[%s1947_s15 + $0x48] sm:$0xff]  ;;  %v438_v39 = vld [vmem:[%s1947_s15 + $0xc0] sm:$0xff] }
  0x20   : > { %v699_v24 = vsel %vm610_vm0, %v484_v21, 0  ;;  %v483_v33 = vpack.c.bf16 %v457_v30, %v456_v29  ;;  %v648_v34 = vsel %vm610_vm0, %v467_v31, 0  ;;  %v439_v40 = vld [vmem:[%s1947_s15 + $0xc8] sm:$0xff]  ;;  %v454_v41 = vld [vmem:[%s1947_s15 + $0x140] sm:$0xff]  ;;  %v466_v43 = vpack.c.bf16 %v423_v38, %v422_v37  ;;  %v420_v51 = vld [vmem:[%s1947_s15 + $0x30] sm:$0xff]  ;;  %564 = vperm.xlu0 %1727, %v509_v58  }
  0x21   : > { %v672_v35 = vsel %vm610_vm0, %v475_v32, 0  ;;  %v455_v42 = vld [vmem:[%s1947_s15 + $0x148] sm:$0xff]  ;;  %v474_v45 = vpack.c.bf16 %v439_v40, %v438_v39  ;;  %v421_v52 = vld [vmem:[%s1947_s15 + $0x38] sm:$0xff]  ;;  %v436_v53 = vld [vmem:[%s1947_s15 + $0xb0] sm:$0xff] }
  0x22   : > { %v696_v36 = vsel %vm610_vm0, %v483_v33, 0  ;;  %v482_v46 = vpack.c.bf16 %v455_v42, %v454_v41  ;;  %v645_v48 = vsel %vm610_vm0, %v466_v43, 0  ;;  %v437_v54 = vld [vmem:[%s1947_s15 + $0xb8] sm:$0xff]  ;;  %v452_v55 = vld [vmem:[%s1947_s15 + $0x130] sm:$0xff]  ;;  %v465_v57 = vpack.c.bf16 %v421_v52, %v420_v51  ;;  %v418_v0 = vld [vmem:[%s1947_s15 + $0x20] sm:$0xff] }
  0x23   : > { %v669_v49 = vsel %vm610_vm0, %v474_v45, 0  ;;  %v453_v56 = vld [vmem:[%s1947_s15 + $0x138] sm:$0xff]  ;;  %v473_v59 = vpack.c.bf16 %v437_v54, %v436_v53  ;;  %v419_v1 = vld [vmem:[%s1947_s15 + $0x28] sm:$0xff]  ;;  %v434_v2 = vld [vmem:[%s1947_s15 + $0xa0] sm:$0xff] }
  0x24   : > { %v693_v50 = vsel %vm610_vm0, %v482_v46, 0  ;;  %v481_v60 = vpack.c.bf16 %v453_v56, %v452_v55  ;;  %v642_v61 = vsel %vm610_vm0, %v465_v57, 0  ;;  %v435_v3 = vld [vmem:[%s1947_s15 + $0xa8] sm:$0xff]  ;;  %v450_v4 = vld [vmem:[%s1947_s15 + $0x120] sm:$0xff]  ;;  %v506_v6 = vld [vmem:[%s2446_s2 + $0x38] sm:$0xff]  ;;  %v464_v9 = vpack.c.bf16 %v419_v1, %v418_v0 }
  0x25   : > { %705 = vmatpush.bf16.xpose.msra.mxu0 %v651_v22  ;;  %v666_v62 = vsel %vm610_vm0, %v473_v59, 0  ;;  %v451_v5 = vld [vmem:[%s1947_s15 + $0x128] sm:$0xff]  ;;  %v510_v7 = vld [vmem:[%s2446_s2 + $0x58] sm:$0xff]  ;;  %v472_v10 = vpack.c.bf16 %v435_v3, %v434_v2  ;;  %v416_v15 = vld [vmem:[%s1947_s15 + $0x10] sm:$0xff] }
  0x26   : > { %748 = vmatpush.bf16.xpose.msra.mxu1 %v675_v23  ;;  %v690_v63 = vsel %vm610_vm0, %v481_v60, 0  ;;  %v508_v8 = vld [vmem:[%s2446_s2 + $0x48] sm:$0xff]  ;;  %v480_v11 = vpack.c.bf16 %v451_v5, %v450_v4  ;;  %569 = vperm.xlu1 %1728, %v510_v7   ;;  %v639_v12 = vsel %vm610_vm0, %v464_v9, 0  ;;  %v417_v16 = vld [vmem:[%s1947_s15 + $0x18] sm:$0xff]  ;;  %v432_v17 = vld [vmem:[%s1947_s15 + $0x90] sm:$0xff] }
  0x27   : > { %791 = vmatpush.bf16.xpose.msra.mxu2 %v699_v24  ;;  %559 = vperm.xlu2 %1729, %v508_v8   ;;  %v663_v13 = vsel %vm610_vm0, %v472_v10, 0  ;;  %v433_v18 = vld [vmem:[%s1947_s15 + $0x98] sm:$0xff]  ;;  %v448_v19 = vld [vmem:[%s1947_s15 + $0x110] sm:$0xff]  ;;  %v463_v22 = vpack.c.bf16 %v417_v16, %v416_v15  ;;  %v414_v28 = vld [vmem:[%s1947_s15] sm:$0xff] }
  0x28   : > { %549 = vperm.xlu0 %1727, %v506_v6   ;;  %v687_v14 = vsel %vm610_vm0, %v480_v11, 0  ;;  %v449_v20 = vld [vmem:[%s1947_s15 + $0x118] sm:$0xff]  ;;  %v501_v21 = vld [vmem:[%s2446_s2 + $0x10] sm:$0xff]  ;;  %v471_v23 = vpack.c.bf16 %v433_v18, %v432_v17  ;;  %v415_v29 = vld [vmem:[%s1947_s15 + $0x8] sm:$0xff] }
  0x29   : > { %v479_v24 = vpack.c.bf16 %v449_v20, %v448_v19  ;;  %v636_v25 = vsel %vm610_vm0, %v463_v22, 0  ;;  %v430_v30 = vld [vmem:[%s1947_s15 + $0x80] sm:$0xff]  ;;  %v431_v31 = vld [vmem:[%s1947_s15 + $0x88] sm:$0xff]  ;;  %v462_v37 = vpack.c.bf16 %v415_v29, %v414_v28  ;;  %v502_v46 = vld [vmem:[%s2446_s2 + $0x18] sm:$0xff] }
  0x2a   : > { %v660_v26 = vsel %vm610_vm0, %v471_v23, 0  ;;  %v446_v32 = vld [vmem:[%s1947_s15 + $0x100] sm:$0xff]  ;;  %v447_v33 = vld [vmem:[%s1947_s15 + $0x108] sm:$0xff]  ;;  %v470_v38 = vpack.c.bf16 %v431_v31, %v430_v30  ;;  %v902_v52 = vld [vmem:[%s2448_s4 + $0x10] sm:$0xff] }
  0x2b   : > { %v684_v27 = vsel %vm610_vm0, %v479_v24, 0  ;;  %v478_v39 = vpack.c.bf16 %v447_v33, %v446_v32  ;;  %v633_v40 = vsel %vm610_vm0, %v462_v37, 0  ;;  %v504_v43 = vld [vmem:[%s2446_s2 + $0x28] sm:$0xff]  ;;  %v1674_v45 = vld [vmem:[%s2445_s1] sm:$0xff]  ;;  %v1677_v55 = vld [vmem:[%s2445_s1 + $0x18] sm:$0xff] }
  0x2c   : > { %v657_v41 = vsel %vm610_vm0, %v470_v38, 0  ;;  %v499_v47 = vld [vmem:[%s2446_s2] sm:$0xff]  ;;  %v905_v51 = vld [vmem:[%s2448_s4 + $0x28] sm:$0xff]  ;;  %v1107_v56 = vld [vmem:[%s2450_s6 + $0x18] sm:$0x1] }
  0x2d   : > { %706 = vmatpush.bf16.xpose.msra.mxu0 %v648_v34  ;;  %v507_v34 = vld [vmem:[%s2446_s2 + $0x40] sm:$0xff]  ;;  %v681_v42 = vsel %vm610_vm0, %v478_v39, 0  ;;  %v901_v54 = vld [vmem:[%s2448_s4 + $0x8] sm:$0xff]  ;;  %v903_v0 = vld [vmem:[%s2448_s4 + $0x18] sm:$0xff] }
  0x2e   : > { %749 = vmatpush.bf16.xpose.msra.mxu1 %v672_v35  ;;  %v505_v35 = vld [vmem:[%s2446_s2 + $0x30] sm:$0xff]  ;;  %554 = vperm.xlu1 %1728, %v507_v34   ;;  %v900_v53 = vld [vmem:[%s2448_s4] sm:$0xff]  ;;  %v1233_v58 = vld [vmem:[%s2452_s8 + $0x8] sm:$0x3] }
  0x2f   : > { %792 = vmatpush.bf16.xpose.msra.mxu2 %v696_v36  ;;  %v500_v36 = vld [vmem:[%s2446_s2 + $0x8] sm:$0xff]  ;;  %544 = vperm.xlu2 %1729, %v505_v35   ;;  %v1104_v57 = vld [vmem:[%s2450_s6] sm:$0xff]  ;;  %v1106_v2 = vld [vmem:[%s2450_s6 + $0x10] sm:$0xff] }
  0x30   : > { %524 = vperm.xlu0 %1727, %v501_v21   ;;  %v1232_v59 = vld [vmem:[%s2452_s8] sm:$0xff]  ;;  %v1679_v1 = vld [vmem:[%s2445_s1 + $0x28] sm:$0xff]  ;;  %v498_v3 = vld [vmem:[%s2445_s1 + $0x30] sm:$0x3] }
  0x31   : > { %v1678_v60 = vld [vmem:[%s2445_s1 + $0x20] sm:$0xff]  ;;  %v1105_v4 = vld [vmem:[%s2450_s6 + $0x8] sm:$0xff]  ;;  %v602_v5 = vunpack.c.l.b16 %v498_v3 }
  0x32   : > { %v1423_v9 = vld [vmem:[%s2453_s9 + $0x8] sm:$0x3] }
  0x33   : > { %v609_v7 = vpack.c.b16 %v602_v5, %v602_v5 }
  0x35   : > { %707 = vmatpush.bf16.xpose.msra.mxu0 %v645_v48  ;;  %v1675_v48 = vld [vmem:[%s2445_s1 + $0x8] sm:$0xff] }
  0x36   : > { %750 = vmatpush.bf16.xpose.msra.mxu1 %v669_v49  ;;  %534 = vperm.xlu1 %1728, %v503_v44   ;;  %v906_v49 = vld [vmem:[%s2448_s4 + $0x30] sm:$0x3] }
  0x37   : > { %793 = vmatpush.bf16.xpose.msra.mxu2 %v693_v50  ;;  %539 = vperm.xlu2 %1729, %v504_v43   ;;  %v1676_v50 = vld [vmem:[%s2445_s1 + $0x10] sm:$0xff] }
  0x38   : > { %519 = vperm.xlu0 %1727, %v500_v36  }
  0x3d   : > { %708 = vmatpush.bf16.xpose.msra.mxu0 %v642_v61  ;;  %v1422_v61 = vld [vmem:[%s2453_s9] sm:$0xff] }
  0x3e   : > { %751 = vmatpush.bf16.xpose.msra.mxu1 %v666_v62  ;;  %529 = vperm.xlu1 %1728, %v502_v46   ;;  %v904_v62 = vld [vmem:[%s2448_s4 + $0x20] sm:$0xff] }
  0x3f   : > { %794 = vmatpush.bf16.xpose.msra.mxu2 %v690_v63  ;;  %514 = vperm.xlu2 %1729, %v499_v47   ;;  %v1464_v63 = vld [vmem:[#allocation2] sm:$0x1] }
  0x40   : > { %934 = vperm.xlu0 %1727, %v905_v51  }
  0x45   : > { %709 = vmatpush.bf16.xpose.msra.mxu0 %v639_v12 }
  0x46   : > { %752 = vmatpush.bf16.xpose.msra.mxu1 %v663_v13  ;;  %939 = vperm.xlu1 %1728, %v906_v49  }
  0x47   : > { %795 = vmatpush.bf16.xpose.msra.mxu2 %v687_v14  ;;  %929 = vperm.xlu2 %1729, %v904_v62  }
  0x48   : > { %909 = vperm.xlu0 %1727, %v900_v53  }
  0x4d   : > { %710 = vmatpush.bf16.xpose.msra.mxu0 %v636_v25 }
  0x4e   : > { %753 = vmatpush.bf16.xpose.msra.mxu1 %v660_v26  ;;  %919 = vperm.xlu1 %1728, %v902_v52  }
  0x4f   : > { %796 = vmatpush.bf16.xpose.msra.mxu2 %v684_v27  ;;  %924 = vperm.xlu2 %1729, %v903_v0  }
  0x50   : > { %1125 = vperm.xlu0 %1727, %v1107_v56  }
  0x55   : > { %711 = vmatpush.bf16.xpose.msra.mxu0 %v633_v40 }
  0x56   : > { %754 = vmatpush.bf16.xpose.msra.mxu1 %v657_v41  ;;  %914 = vperm.xlu1 %1728, %v901_v54  }
  0x57   : > { %797 = vmatpush.bf16.xpose.msra.mxu2 %v681_v42  ;;  %1120 = vperm.xlu2 %1729, %v1106_v2  }
  0x58   : > { %1241 = vperm.xlu0 %1727, %v1233_v58  }
  0x5c   : > { %1599 = vmatmul.msk.bf16.vlgmr.msra.gmra.mxu0 %vm610_vm0, %v1674_v45 }
  0x5d   : > { %1606 = vmatmul.msk.bf16.vlgmr.msra.gmra.mxu1 %vm610_vm0, %v1674_v45 }
  0x5e   : > { %1613 = vmatmul.msk.bf16.vlgmr.msra.gmra.mxu2 %vm610_vm0, %v1674_v45  ;;  %1110 = vperm.xlu1 %1728, %v1104_v57  }
  0x5f   : > { %1115 = vperm.xlu2 %1729, %v1105_v4  }
  0x60   : > { %1426 = vperm.xlu0 %1727, %v1422_v61  }
  0x66   : > { %1236 = vperm.xlu1 %1728, %v1232_v59  }
  0x67   : > { %1431 = vperm.xlu2 %1729, %v1423_v9  }
  0x6c   : > { %1600 = vmatmul.msk.bf16.gmra.mxu0 %vm610_vm0, %v1675_v48 }
  0x6d   : > { %1607 = vmatmul.msk.bf16.gmra.mxu1 %vm610_vm0, %v1675_v48 }
  0x6e   : > { %1614 = vmatmul.msk.bf16.gmra.mxu2 %vm610_vm0, %v1675_v48  ;;  %1467 = vperm.xlu1 %1728, %v1464_v63  }
  0x7c   : > { %1601 = vmatmul.msk.bf16.gmra.mxu0 %vm610_vm0, %v1676_v50 }
  0x7d   : > { %1608 = vmatmul.msk.bf16.gmra.mxu1 %vm610_vm0, %v1676_v50 }
  0x7e   : > { %1615 = vmatmul.msk.bf16.gmra.mxu2 %vm610_vm0, %v1676_v50 }
  0x81   : > { %v2146_v8 = vpop.permute.xlu2 %559 }
  0x89   : > { %v2153_v11 = vpop.permute.xlu2 %544 }
  0x8a   : > { %v2141_v6 = vpop.permute.xlu0 %574 }
  0x8c   : > { %1602 = vmatmul.msk.bf16.gmra.mxu0 %vm610_vm0, %v1677_v55 }
  0x8d   : > { %1609 = vmatmul.msk.bf16.gmra.mxu1 %vm610_vm0, %v1677_v55 }
  0x8e   : > { %1616 = vmatmul.msk.bf16.gmra.mxu2 %vm610_vm0, %v1677_v55 }
  0x91   : > { %v2159_v14 = vpop.permute.xlu2 %539 }
  0x92   : > { %v2151_v10 = vpop.permute.xlu0 %564 }
  0x98   : > { %v2157_v13 = vpop.permute.xlu1 %569 }
  0x99   : > { %v515_v19 = vpop.permute.xlu2 %514 }
  0x9a   : > { %v2155_v12 = vpop.permute.xlu0 %549 }
  0x9c   : > { %1603 = vmatmul.msk.bf16.gmra.mxu0 %vm610_vm0, %v1678_v60 }
  0x9d   : > { %1610 = vmatmul.msk.bf16.gmra.mxu1 %vm610_vm0, %v1678_v60 }
  0x9e   : > { %1617 = vmatmul.msk.bf16.gmra.mxu2 %vm610_vm0, %v1678_v60 }
  0xa0   : > { %v2161_v18 = vpop.permute.xlu1 %554 }
  0xa2   : > { %v525_v15 = vpop.permute.xlu0 %524 }
  0xa8   : > { %v535_v29 = vpop.permute.xlu1 %534 }
  0xaa   : > { %v520_v20 = vpop.permute.xlu0 %519 }
  0xac   : > { %1604 = vmatmul.msk.bf16.gmra.mxu0 %vm610_vm0, %v1679_v1 }
  0xad   : > { %1611 = vmatmul.msk.bf16.gmra.mxu1 %vm610_vm0, %v1679_v1 }
  0xae   : > { %1618 = vmatmul.msk.bf16.gmra.mxu2 %vm610_vm0, %v1679_v1 }
  0xb0   : > { %v530_v38 = vpop.permute.xlu1 %529 }
  0xbc   : > { %1605 = vmatmul.msk.bf16.gmra.mxu0 %vm610_vm0, %v609_v7 }
  0xbd   : > { %1612 = vmatmul.msk.bf16.gmra.mxu1 %vm610_vm0, %v609_v7 }
  0xbe   : > { %1619 = vmatmul.msk.bf16.gmra.mxu2 %vm610_vm0, %v609_v7 }
  0xd9   : > { %v713_v16 = vpop.f32.mrf.mxu0 }
  0xda   : > { %v756_v17 = vpop.f32.mrf.mxu1  ;;  %v714_v21 = vadd.f32 %v713_v16, %v515_v19 }
  0xdb   : > { %v757_v48 = vadd.f32 %v756_v17, %v515_v19 }
  0xdc   : > { %v833_v26 = vmax.f32 %v714_v21, 0.0 }
  0xdd   : > { %v834_v55 = vmax.f32 %v757_v48, 0.0 }
  0xe1   : > { %v799_v22 = vpop.f32.mrf.mxu2  ;;  %v715_v23 = vpop.f32.mrf.mxu0 }
  0xe2   : > { %v716_v24 = vadd.f32 %v715_v23, %v520_v20  ;;  %v758_v25 = vpop.f32.mrf.mxu1  ;;  %v800_v28 = vadd.f32 %v799_v22, %v515_v19 }
  0xe3   : > { %v759_v49 = vadd.f32 %v758_v25, %v520_v20 }
  0xe4   : > { %v836_v27 = vmax.f32 %v716_v24, 0.0  ;;  %v835_v32 = vmax.f32 %v800_v28, 0.0 }
  0xe5   : > { %v837_v56 = vmax.f32 %v759_v49, 0.0 }
  0xe6   : > { %v2163_v30 = vpack.c.bf16 %v836_v27, %v833_v26 }
  0xe7   : > { %v2171_v59 = vpack.c.bf16 %v837_v56, %v834_v55 }
  0xe9   : > { %v801_v31 = vpop.f32.mrf.mxu2  ;;  %v718_v34 = vpop.f32.mrf.mxu0 }
  0xea   : > { %v802_v33 = vadd.f32 %v801_v31, %v520_v20  ;;  %v761_v35 = vpop.f32.mrf.mxu1  ;;  %v719_v39 = vadd.f32 %v718_v34, %v525_v15 }
  0xeb   : > { %v762_v5 = vadd.f32 %v761_v35, %v525_v15 }
  0xec   : > { %v838_v36 = vmax.f32 %v802_v33, 0.0  ;;  %v839_v44 = vmax.f32 %v719_v39, 0.0 }
  0xed   : > { %v840_v21 = vmax.f32 %v762_v5, 0.0 }
  0xee   : > { %v2165_v37 = vpack.c.bf16 %v838_v36, %v835_v32 }
  0xf1   : > { %v804_v40 = vpop.f32.mrf.mxu2  ;;  %v720_v41 = vpop.f32.mrf.mxu0 }
  0xf2   : > { %v721_v42 = vadd.f32 %v720_v41, %v530_v38  ;;  %v763_v43 = vpop.f32.mrf.mxu1  ;;  %v805_v46 = vadd.f32 %v804_v40, %v525_v15 }
  0xf3   : > { %v764_v7 = vadd.f32 %v763_v43, %v530_v38 }
  0xf4   : > { %v842_v45 = vmax.f32 %v721_v42, 0.0  ;;  %v841_v51 = vmax.f32 %v805_v46, 0.0 }
  0xf5   : > { %v843_v22 = vmax.f32 %v764_v7, 0.0 }
  0xf6   : > { %v2167_v47 = vpack.c.bf16 %v842_v45, %v839_v44 }
  0xf7   : > { %v2181_v25 = vpack.c.bf16 %v843_v22, %v840_v21 }
  0xf9   : > { %v806_v50 = vpop.f32.mrf.mxu2  ;;  %v723_v53 = vpop.f32.mrf.mxu0 }
  0xfa   : > { %v807_v52 = vadd.f32 %v806_v50, %v530_v38  ;;  %v766_v54 = vpop.f32.mrf.mxu1  ;;  %v724_v60 = vadd.f32 %v723_v53, %v535_v29 }
  0xfb   : > { %v767_v32 = vadd.f32 %v766_v54, %v535_v29 }
  0xfc   : > { %v844_v57 = vmax.f32 %v807_v52, 0.0  ;;  %v845_v1 = vmax.f32 %v724_v60, 0.0 }
  0xfd   : > { %v846_v38 = vmax.f32 %v767_v32, 0.0 }
  0xfe   : > { %v2169_v58 = vpack.c.bf16 %v844_v57, %v841_v51 }
 0x101   : > { %v809_v61 = vpop.f32.mrf.mxu2  ;;  %v725_v62 = vpop.f32.mrf.mxu0 }
 0x102   : > { %v726_v63 = vadd.f32 %v725_v62, %v2159_v14  ;;  %v768_v0 = vpop.f32.mrf.mxu1  ;;  %v810_v3 = vadd.f32 %v809_v61, %v535_v29 }
 0x103   : > { %v769_v33 = vadd.f32 %v768_v0, %v2159_v14 }
 0x104   : > { %v848_v2 = vmax.f32 %v726_v63, 0.0  ;;  %v847_v16 = vmax.f32 %v810_v3, 0.0 }
 0x105   : > { %v849_v39 = vmax.f32 %v769_v33, 0.0 }
 0x106   : > { %v2174_v4 = vpack.c.bf16 %v848_v2, %v845_v1 }
 0x107   : > { %v2190_v48 = vpack.c.bf16 %v849_v39, %v846_v38 }
 0x109   : > { %v811_v9 = vpop.f32.mrf.mxu2  ;;  %v2177_v19 = vpop.f32.mrf.mxu0 }
 0x10a   : > { %v812_v17 = vadd.f32 %v811_v9, %v2159_v14  ;;  %v771_v20 = vpop.f32.mrf.mxu1 }
 0x10b   : > { %v772_v26 = vadd.f32 %v771_v20, %v2153_v11 }
 0x10c   : > { %v850_v23 = vmax.f32 %v812_v17, 0.0 }
 0x10d   : > { %v852_v34 = vmax.f32 %v772_v26, 0.0 }
 0x10e   : > { %v2179_v24 = vpack.c.bf16 %v850_v23, %v847_v16 }
 0x111   : > { %v814_v27 = vpop.f32.mrf.mxu2  ;;  %v730_v28 = vpop.f32.mrf.mxu0 }
 0x112   : > { %v773_v15 = vpop.f32.mrf.mxu1  ;;  %v815_v35 = vadd.f32 %v814_v27, %v2153_v11 }
 0x113   : > { %v774_v31 = vadd.f32 %v773_v15, %v2155_v12 }
 0x114   : > { %v853_v42 = vmax.f32 %v815_v35, 0.0 }
 0x115   : > { %v855_v36 = vmax.f32 %v774_v31, 0.0  ;;  %v731_v31 = vadd.f32 %v730_v28, %v2155_v12 }
 0x117   : > { %v2187_v41 = vpack.c.bf16 %v855_v36, %v852_v34  ;;  %v729_v34 = vadd.f32 %v2177_v19, %v2153_v11  ;;  %v854_v36 = vmax.f32 %v731_v31, 0.0 }
 0x119   : > { %v816_v40 = vpop.f32.mrf.mxu2  ;;  %v733_v44 = vpop.f32.mrf.mxu0 }
 0x11a   : > { %v817_v43 = vadd.f32 %v816_v40, %v2155_v12  ;;  %v776_v45 = vpop.f32.mrf.mxu1  ;;  %v734_v23 = vadd.f32 %v733_v44, %v2161_v18  ;;  %v851_v40 = vmax.f32 %v729_v34, 0.0 }
 0x11b   : > { %v777_v11 = vadd.f32 %v776_v45, %v2161_v18 }
 0x11c   : > { %v856_v46 = vmax.f32 %v817_v43, 0.0  ;;  %v857_v35 = vmax.f32 %v734_v23, 0.0 }
 0x11e   : > { %v2192_v29 = vpack.c.bf16 %v856_v46, %v853_v42  ;;  %v888_v42 = vpack.c.bf16 %v854_v36, %v851_v40 }
 0x121   : > { %v819_v14 = vpop.f32.mrf.mxu2  ;;  %v735_v49 = vpop.f32.mrf.mxu0 }
 0x122   : > { %v778_v50 = vpop.f32.mrf.mxu1  ;;  %v820_v51 = vadd.f32 %v819_v14, %v2161_v18  ;;  %v736_v17 = vadd.f32 %v735_v49, %v2146_v8 }
 0x123   : > { %v779_v19 = vadd.f32 %v778_v50, %v2146_v8 }
 0x124   : > { %v859_v53 = vmax.f32 %v820_v51, 0.0  ;;  %v860_v32 = vmax.f32 %v736_v17, 0.0  ;;  %v1680_v51 = vld [vmem:[%s2447_s3] sm:$0xff] }
 0x126   : > { %v891_v38 = vpack.c.bf16 %v860_v32, %v857_v35 }
 0x129   : > { %v821_v52 = vpop.f32.mrf.mxu2  ;;  %v738_v55 = vpop.f32.mrf.mxu0 }
 0x12a   : > { %v822_v54 = vadd.f32 %v821_v52, %v2146_v8  ;;  %v781_v56 = vpop.f32.mrf.mxu1  ;;  %v739_v9 = vadd.f32 %v738_v55, %v2151_v10  ;;  %v858_v52 = vmax.f32 %v777_v11, 0.0 }
 0x12b   : > { %v782_v12 = vadd.f32 %v781_v56, %v2151_v10 }
 0x12c   : > { %v862_v57 = vmax.f32 %v822_v54, 0.0  ;;  %v863_v26 = vmax.f32 %v739_v9, 0.0 }
 0x12d   : > { %v864_v14 = vmax.f32 %v782_v12, 0.0 }
 0x12e   : > { %v2196_v60 = vpack.c.bf16 %v862_v57, %v859_v53  ;;  %v861_v53 = vmax.f32 %v779_v19, 0.0 }
 0x130   : > { %v892_v18 = vpack.c.bf16 %v861_v53, %v858_v52 }
 0x131   : > { %v2198_v61 = vpop.f32.mrf.mxu2  ;;  %v740_v62 = vpop.f32.mrf.mxu0 }
 0x132   : > { %v783_v63 = vpop.f32.mrf.mxu1  ;;  %v741_v5 = vadd.f32 %v740_v62, %v2157_v13  ;;  %v825_v55 = vadd.f32 %v2198_v61, %v2151_v10  ;;  %v878_v10 = vld [vmem:[%s2447_s3 + $0x18] sm:$0x1]  ;;  %v2257_v62 = vpop.permute.xlu2 %929 }
 0x133   : > { %v784_v28 = vadd.f32 %v783_v63, %v2157_v13 }
 0x134   : > { %v866_v20 = vmax.f32 %v741_v5, 0.0  ;;  %v865_v56 = vmax.f32 %v825_v55, 0.0 }
 0x135   : > { %v867_v49 = vmax.f32 %v784_v28, 0.0  ;;  %v1650_v28 = vld [vmem:[%s2449_s5 + $0x8] sm:$0xf] }
 0x136   : > { %v894_v33 = vpack.c.bf16 %v866_v20, %v863_v26 }
 0x139   : > { %v826_v0 = vpop.f32.mrf.mxu2  ;;  %v743_v1 = vpop.f32.mrf.mxu0 }
 0x13a   : > { %v744_v2 = vadd.f32 %v743_v1, %v2141_v6  ;;  %v786_v3 = vpop.f32.mrf.mxu1  ;;  %v827_v50 = vadd.f32 %v826_v0, %v2157_v13  ;;  %v955_v13 = vunpack.c.l.b16 %v878_v10  ;;  %v2262_v1 = vpop.permute.xlu0 %934 }
 0x13b   : > { %v787_v43 = vadd.f32 %v786_v3, %v2141_v6  ;;  %v2267_v9 = vpop.permute.xlu2 %924 }
 0x13c   : > { %v869_v7 = vmax.f32 %v744_v2, 0.0 }
 0x13d   : > { %v870_v44 = vmax.f32 %v787_v43, 0.0  ;;  %v2281_v43 = vld [vmem:[%s2449_s5] sm:$0xff] }
 0x13e   : > { %v897_v16 = vpack.c.bf16 %v869_v7, %v869_v7 }
 0x13f   : > { %v898_v46 = vpack.c.bf16 %v870_v44, %v870_v44 }
 0x140   : > { %v975_v22 = vsel %vm973_vm1, %v897_v16, 0 }
 0x141   : > { %v829_v21 = vpop.f32.mrf.mxu2  ;;  %v745_v27 = vpop.f32.mrf.mxu0  ;;  %984 = vmatpush.bf16.msra.mxu3 %v975_v22 }
 0x142   : > { %v788_v15 = vpop.f32.mrf.mxu1  ;;  %v830_v8 = vadd.f32 %v829_v21, %v2141_v6  ;;  %v868_v6 = vmax.f32 %v827_v50, 0.0 }
 0x144   : > { %v871_v45 = vmax.f32 %v830_v8, 0.0  ;;  %v896_v57 = vpack.c.bf16 %v868_v6, %v865_v56 }
 0x145   : > { %985 = vmatpush.bf16.msra.mxu3 %v894_v33  ;;  %v2275_v33 = vpop.permute.xlu0 %909 }
 0x146   : > { %v899_v54 = vpack.c.bf16 %v871_v45, %v871_v45 }
 0x149   : > { %v831_v39 = vpop.f32.mrf.mxu2  ;;  %986 = vmatpush.bf16.msra.mxu3 %v891_v38 }
 0x14d   : > { %987 = vmatpush.bf16.msra.mxu3 %v888_v42 }
 0x151   : > { %988 = vmatpush.bf16.msra.mxu3 %v2174_v4  ;;  %v978_v4 = vsel %vm973_vm1, %v898_v46, 0  ;;  %v1684_v46 = vld [vmem:[%s2449_s5 + $0x8] sm:$0x10] }
 0x152   : > { %v2291_v11 = vor.u32 %v1684_v46, %v1650_v28 }
 0x155   : > { %989 = vmatpush.bf16.msra.mxu3 %v2167_v47  ;;  %v895_v47 = vpack.c.bf16 %v867_v49, %v864_v14 }
 0x159   : > { %990 = vmatpush.bf16.msra.mxu3 %v2163_v30  ;;  %v1681_v30 = vld [vmem:[%s2447_s3 + $0x8] sm:$0xff] }
 0x15c   : > { %1632 = vmatmul.msk.bf16.vlgmr.msra.gmra.mxu3 %vm960_vm2, %v1680_v51 }
 0x15d   : > { %1012 = vmatpush.bf16.msrb.mxu3 %v978_v4 }
 0x161   : > { %1013 = vmatpush.bf16.msrb.mxu3 %v895_v47 }
 0x165   : > { %1014 = vmatpush.bf16.msrb.mxu3 %v892_v18 }
 0x169   : > { %1015 = vmatpush.bf16.msrb.mxu3 %v2187_v41  ;;  %v981_v41 = vsel %vm973_vm1, %v899_v54, 0 }
 0x16c   : > { %1633 = vmatmul.msk.bf16.gmra.mxu3 %vm960_vm2, %v1681_v30 }
 0x16d   : > { %1016 = vmatpush.bf16.msrb.mxu3 %v2190_v48  ;;  %v1682_v48 = vld [vmem:[%s2447_s3 + $0x10] sm:$0xff] }
 0x171   : > { %1017 = vmatpush.bf16.msrb.mxu3 %v2181_v25 }
 0x175   : > { %1018 = vmatpush.bf16.msrb.mxu3 %v2171_v59  ;;  %v959_v59 = vpack.c.b16 %v955_v13, %v955_v13 }
 0x179   : > { %1040 = vmatpush.bf16.msra.mxu3 %v981_v41 }
 0x17c   : > { %1634 = vmatmul.msk.bf16.gmra.mxu3 %vm960_vm2, %v1682_v48 }
 0x17d   : > { %1041 = vmatpush.bf16.msra.mxu3 %v896_v57 }
 0x181   : > { %1042 = vmatpush.bf16.msra.mxu3 %v2196_v60  ;;  %v2255_v60 = vpop.permute.xlu1 %939 }
 0x185   : > { %1043 = vmatpush.bf16.msra.mxu3 %v2192_v29 }
 0x189   : > { %1044 = vmatpush.bf16.msra.mxu3 %v2179_v24  ;;  %v2260_v63 = vpop.permute.xlu1 %919 }
 0x18c   : > { %1635 = vmatmul.msk.bf16.gmra.mxu3 %vm960_vm2, %v959_v59 }
 0x18d   : > { %1045 = vmatpush.bf16.msra.mxu3 %v2169_v58 }
 0x191   : > { %1046 = vmatpush.bf16.msra.mxu3 %v2165_v37  ;;  %v2272_v27 = vpop.permute.xlu1 %914 }
 0x19c   : > { %1636 = vmatmul.msk.bf16.vlgmr.msrb.gmra.mxu3 %vm960_vm2, %v1680_v51 }
 0x1ac   : > { %1637 = vmatmul.msk.bf16.gmra.mxu3 %vm960_vm2, %v1681_v30 }
 0x1bc   : > { %1638 = vmatmul.msk.bf16.gmra.mxu3 %vm960_vm2, %v1682_v48 }
 0x1cc   : > { %1639 = vmatmul.msk.bf16.gmra.mxu3 %vm960_vm2, %v959_v59 }
 0x1dc   : > { %1640 = vmatmul.msk.bf16.vlgmr.msra.gmra.mxu3 %vm960_vm2, %v1680_v51 }
 0x1df   : > { %v992_v25 = vpop.f32.mrf.mxu3 }
 0x1e0   : > { %v993_v34 = vadd.f32 %v992_v25, %v2275_v33 }
 0x1e2   : > { %v1067_v39 = vmax.f32 %v993_v34, 0.0 }
 0x1e7   : > { %v994_v24 = vpop.f32.mrf.mxu3 }
 0x1e8   : > { %v995_v15 = vadd.f32 %v994_v24, %v2272_v27 }
 0x1ea   : > { %v1070_v36 = vmax.f32 %v995_v15, 0.0 }
 0x1ec   : > { %1641 = vmatmul.msk.bf16.gmra.mxu3 %vm960_vm2, %v1681_v30  ;;  %v1092_v42 = vpack.c.bf16 %v1070_v36, %v1067_v39  ;;  %v1121_v39 = vpop.permute.xlu2 %1120 }
 0x1ef   : > { %v997_v58 = vpop.f32.mrf.mxu3 }
 0x1f0   : > { %v998_v22 = vadd.f32 %v997_v58, %v2260_v63 }
 0x1f2   : > { %v1073_v35 = vmax.f32 %v998_v22, 0.0 }
 0x1f4   : > { %v1116_v46 = vpop.permute.xlu2 %1115 }
 0x1f7   : > { %v999_v29 = vpop.f32.mrf.mxu3 }
 0x1f8   : > { %v1000_v17 = vadd.f32 %v999_v29, %v2267_v9 }
 0x1fa   : > { %v1076_v31 = vmax.f32 %v1000_v17, 0.0 }
 0x1fc   : > { %1642 = vmatmul.msk.bf16.gmra.mxu3 %vm960_vm2, %v1682_v48  ;;  %v1095_v38 = vpack.c.bf16 %v1076_v31, %v1073_v35 }
 0x1ff   : > { %v1002_v37 = vpop.f32.mrf.mxu3 }
 0x200   : > { %v1003_v7 = vadd.f32 %v1002_v37, %v2257_v62 }
 0x202   : > { %v1079_v23 = vmax.f32 %v1003_v7, 0.0 }
 0x207   : > { %v1004_v61 = vpop.f32.mrf.mxu3 }
 0x208   : > { %v1005_v3 = vadd.f32 %v1004_v61, %v2262_v1 }
 0x20a   : > { %v1082_v20 = vmax.f32 %v1005_v3, 0.0 }
 0x20c   : > { %1643 = vmatmul.msk.bf16.gmra.mxu3 %vm960_vm2, %v959_v59  ;;  %v1098_v32 = vpack.c.bf16 %v1082_v20, %v1079_v23 }
 0x20f   : > { %v1007_v0 = vpop.f32.mrf.mxu3 }
 0x210   : > { %v1008_v2 = vadd.f32 %v1007_v0, %v2255_v60 }
 0x212   : > { %v1085_v5 = vmax.f32 %v1008_v2, 0.0 }
 0x214   : > { %v1101_v16 = vpack.c.bf16 %v1085_v5, %v1085_v5 }
 0x216   : > { %v1147_v21 = vsel %vm1145_vm3, %v1101_v16, 0 }
 0x217   : > { %v1009_v26 = vpop.f32.mrf.mxu3  ;;  %1159 = vmatpush.bf16.msrb.mxu0 %v1147_v21 }
 0x21b   : > { %1160 = vmatpush.bf16.msrb.mxu0 %v1098_v32 }
 0x21f   : > { %v1020_v40 = vpop.f32.mrf.mxu3  ;;  %1161 = vmatpush.bf16.msrb.mxu0 %v1095_v38 }
 0x220   : > { %v1021_v57 = vadd.f32 %v1020_v40, %v2275_v33 }
 0x222   : > { %v1068_v59 = vmax.f32 %v1021_v57, 0.0 }
 0x223   : > { %1162 = vmatpush.bf16.msrb.mxu0 %v1092_v42 }
 0x226   : > { %1652 = vmatmul.msk.bf16.vlgmr.msrb.gmra.mxu0 %vm1138_vm4, %v2281_v43 }
 0x227   : > { %v1022_v44 = vpop.f32.mrf.mxu3 }
 0x228   : > { %v1023_v6 = vadd.f32 %v1022_v44, %v2272_v27 }
 0x22a   : > { %v1071_v10 = vmax.f32 %v1023_v6, 0.0 }
 0x22c   : > { %v1093_v24 = vpack.c.bf16 %v1071_v10, %v1068_v59 }
 0x22f   : > { %v1025_v12 = vpop.f32.mrf.mxu3 }
 0x230   : > { %v1026_v50 = vadd.f32 %v1025_v12, %v2260_v63  ;;  %v1830_v12 = vmov 65535  }
 0x231   : > { %v1255_v28 = vsel %vm1253_vm5, 4294967295, %v1830_v12 }
 0x232   : > { %v1074_v48 = vmax.f32 %v1026_v50, 0.0 }
 0x236   : > { %1653 = vmatmul.msk.bf16.gmra.mxu0 %vm1138_vm4, %v2291_v11 }
 0x237   : > { %v1027_v19 = vpop.f32.mrf.mxu3 }
 0x238   : > { %v1028_v8 = vadd.f32 %v1027_v19, %v2267_v9 }
 0x23a   : > { %v1077_v41 = vmax.f32 %v1028_v8, 0.0  ;;  %v1685_v8 = vld [vmem:[%s2451_s7] sm:$0x10] }
 0x23c   : > { %v1096_v13 = vpack.c.bf16 %v1077_v41, %v1074_v48 }
 0x23f   : > { %v1030_v14 = vpop.f32.mrf.mxu3 }
 0x240   : > { %v1031_v47 = vadd.f32 %v1030_v14, %v2257_v62 }
 0x242   : > { %v1080_v54 = vmax.f32 %v1031_v47, 0.0 }
 0x247   : > { %v1032_v49 = vpop.f32.mrf.mxu3 }
 0x248   : > { %v1033_v52 = vadd.f32 %v1032_v49, %v2262_v1 }
 0x24a   : > { %v1083_v30 = vmax.f32 %v1033_v52, 0.0 }
 0x24c   : > { %v1099_v56 = vpack.c.bf16 %v1083_v30, %v1080_v54 }
 0x24f   : > { %v1035_v51 = vpop.f32.mrf.mxu3 }
 0x250   : > { %v1036_v4 = vadd.f32 %v1035_v51, %v2255_v60  ;;  %v1111_v51 = vpop.permute.xlu1 %1110 }
 0x252   : > { %v1086_v53 = vmax.f32 %v1036_v4, 0.0 }
 0x254   : > { %v1102_v18 = vpack.c.bf16 %v1086_v53, %v1086_v53 }
 0x256   : > { %v1150_v45 = vsel %vm1145_vm3, %v1102_v18, 0 }
 0x257   : > { %v1037_v55 = vpop.f32.mrf.mxu3  ;;  %1178 = vmatpush.bf16.msrb.mxu1 %v1150_v45 }
 0x25b   : > { %1179 = vmatpush.bf16.msrb.mxu1 %v1099_v56 }
 0x25f   : > { %v1048_v25 = vpop.f32.mrf.mxu3  ;;  %1180 = vmatpush.bf16.msrb.mxu1 %v1096_v13 }
 0x263   : > { %1181 = vmatpush.bf16.msrb.mxu1 %v1093_v24 }
 0x266   : > { %1654 = vmatmul.msk.bf16.vlgmr.msrb.gmra.mxu1 %vm1138_vm4, %v2281_v43 }
 0x267   : > { %v1050_v58 = vpop.f32.mrf.mxu3 }
 0x268   : > { %v1051_v31 = vadd.f32 %v1050_v58, %v2272_v27 }
 0x26f   : > { %v1053_v29 = vpop.f32.mrf.mxu3 }
 0x270   : > { %v1054_v23 = vadd.f32 %v1053_v29, %v2260_v63 }
 0x272   : > { %v1075_v34 = vmax.f32 %v1054_v23, 0.0 }
 0x276   : > { %1655 = vmatmul.msk.bf16.gmra.mxu1 %vm1138_vm4, %v2291_v11 }
 0x277   : > { %v1055_v37 = vpop.f32.mrf.mxu3 }
 0x278   : > { %v1056_v20 = vadd.f32 %v1055_v37, %v2267_v9 }
 0x27a   : > { %v1078_v32 = vmax.f32 %v1056_v20, 0.0 }
 0x27c   : > { %v1097_v35 = vpack.c.bf16 %v1078_v32, %v1075_v34 }
 0x27f   : > { %v1058_v61 = vpop.f32.mrf.mxu3 }
 0x280   : > { %v1059_v16 = vadd.f32 %v1058_v61, %v2257_v62  ;;  %v1072_v62 = vmax.f32 %v1051_v31, 0.0 }
 0x282   : > { %v1081_v26 = vmax.f32 %v1059_v16, 0.0 }
 0x287   : > { %v1060_v0 = vpop.f32.mrf.mxu3 }
 0x288   : > { %v1061_v5 = vadd.f32 %v1060_v0, %v2262_v1  ;;  %v1049_v1 = vadd.f32 %v1048_v25, %v2275_v33  ;;  %v1126_v33 = vpop.permute.xlu0 %1125 }
 0x28a   : > { %v1084_v21 = vmax.f32 %v1061_v5, 0.0  ;;  %v1069_v36 = vmax.f32 %v1049_v1, 0.0 }
 0x28c   : > { %v1094_v9 = vpack.c.bf16 %v1072_v62, %v1069_v36 }
 0x28f   : > { %v1063_v2 = vpop.f32.mrf.mxu3 }
 0x290   : > { %v1064_v3 = vadd.f32 %v1063_v2, %v2255_v60  ;;  %v1100_v60 = vpack.c.bf16 %v1084_v21, %v1081_v26  ;;  %v1242_v1 = vpop.permute.xlu0 %1241 }
 0x292   : > { %v1087_v7 = vmax.f32 %v1064_v3, 0.0 }
 0x294   : > { %v1103_v17 = vpack.c.bf16 %v1087_v7, %v1087_v7 }
 0x296   : > { %v1153_v22 = vsel %vm1145_vm3, %v1103_v17, 0 }
 0x297   : > { %v1065_v15 = vpop.f32.mrf.mxu3  ;;  %1197 = vmatpush.bf16.msrb.mxu2 %v1153_v22 }
 0x29b   : > { %1198 = vmatpush.bf16.msrb.mxu2 %v1100_v60 }
 0x29f   : > { %1199 = vmatpush.bf16.msrb.mxu2 %v1097_v35  ;;  %v1237_v35 = vpop.permute.xlu1 %1236 }
 0x2a3   : > { %v1164_v38 = vpop.f32.mrf.mxu0  ;;  %1200 = vmatpush.bf16.msrb.mxu2 %v1094_v9 }
 0x2a4   : > { %v1165_v4 = vadd.f32 %v1164_v38, %v1111_v51 }
 0x2a6   : > { %1656 = vmatmul.msk.bf16.vlgmr.msrb.gmra.mxu2 %vm1138_vm4, %v2281_v43  ;;  %v1256_v43 = vsel %vm1254_vm6, %v1255_v28, 0  ;;  %v1212_v18 = vmax.f32 %v1165_v4, 0.0 }
 0x2ab   : > { %v1166_v63 = vpop.f32.mrf.mxu0 }
 0x2ac   : > { %v1167_v19 = vadd.f32 %v1166_v63, %v1116_v46 }
 0x2ae   : > { %v1215_v53 = vmax.f32 %v1167_v19, 0.0 }
 0x2b0   : > { %v1226_v30 = vpack.c.bf16 %v1215_v53, %v1212_v18 }
 0x2b3   : > { %v1169_v40 = vpop.f32.mrf.mxu0 }
 0x2b4   : > { %v1170_v27 = vadd.f32 %v1169_v40, %v1121_v39 }
 0x2b6   : > { %1657 = vmatmul.msk.bf16.gmra.mxu2 %vm1138_vm4, %v2291_v11  ;;  %v1218_v14 = vmax.f32 %v1170_v27, 0.0  ;;  %v1660_v11 = vld [vmem:[%s2451_s7] sm:$0xf] }
 0x2b7   : > { %v1661_v45 = vor.u32 %v1685_v8, %v1660_v11 }
 0x2bb   : > { %v1171_v42 = vpop.f32.mrf.mxu0 }
 0x2bc   : > { %v1172_v44 = vadd.f32 %v1171_v42, %v1126_v33 }
 0x2be   : > { %v1221_v49 = vmax.f32 %v1172_v44, 0.0 }
 0x2c0   : > { %v1229_v52 = vpack.c.bf16 %v1221_v49, %v1218_v14 }
 0x2c2   : > { %v1258_v47 = vand.u32 %v1256_v43, %v1229_v52 }
 0x2c4   : > { %1272 = vmatpush.bf16.msra.mxu0 %v1258_v47 }
 0x2c8   : > { %1273 = vmatpush.bf16.msra.mxu0 %v1226_v30 }
 0x2cb   : > { %1662 = vmatmul.msk.bf16.vlgmr.msra.gmra.mxu0 %vm1249_vm7, %v1661_v45 }
 0x2e3   : > { %v1183_v50 = vpop.f32.mrf.mxu1 }
 0x2e4   : > { %v1184_v13 = vadd.f32 %v1183_v50, %v1111_v51 }
 0x2e6   : > { %v1213_v58 = vmax.f32 %v1184_v13, 0.0 }
 0x2eb   : > { %v1185_v54 = vpop.f32.mrf.mxu1 }
 0x2ec   : > { %v1186_v57 = vadd.f32 %v1185_v54, %v1116_v46 }
 0x2ee   : > { %v1216_v25 = vmax.f32 %v1186_v57, 0.0 }
 0x2f0   : > { %v1227_v29 = vpack.c.bf16 %v1216_v25, %v1213_v58 }
 0x2f3   : > { %v1188_v55 = vpop.f32.mrf.mxu1 }
 0x2f4   : > { %v1189_v6 = vadd.f32 %v1188_v55, %v1121_v39 }
 0x2f6   : > { %v1219_v48 = vmax.f32 %v1189_v6, 0.0 }
 0x2fb   : > { %v1190_v41 = vpop.f32.mrf.mxu1 }
 0x2fc   : > { %v1191_v56 = vadd.f32 %v1190_v41, %v1126_v33 }
 0x2fe   : > { %v1222_v10 = vmax.f32 %v1191_v56, 0.0 }
 0x300   : > { %v1230_v59 = vpack.c.bf16 %v1222_v10, %v1219_v48 }
 0x302   : > { %v1261_v24 = vand.u32 %v1256_v43, %v1230_v59 }
 0x304   : > { %1286 = vmatpush.bf16.msra.mxu1 %v1261_v24 }
 0x308   : > { %1287 = vmatpush.bf16.msra.mxu1 %v1227_v29 }
 0x30b   : > { %1663 = vmatmul.msk.bf16.vlgmr.msra.gmra.mxu1 %vm1249_vm7, %v1661_v45 }
 0x329   : > { %v1202_v37 = vpop.f32.mrf.mxu2 }
 0x32a   : > { %v1203_v20 = vadd.f32 %v1202_v37, %v1111_v51 }
 0x32c   : > { %v1214_v26 = vmax.f32 %v1203_v20, 0.0 }
 0x331   : > { %v1204_v61 = vpop.f32.mrf.mxu2 }
 0x332   : > { %v1205_v7 = vadd.f32 %v1204_v61, %v1116_v46 }
 0x334   : > { %v1217_v22 = vmax.f32 %v1205_v7, 0.0 }
 0x336   : > { %v1228_v15 = vpack.c.bf16 %v1217_v22, %v1214_v26  ;;  %v2361_v22 = vpop.permute.xlu2 %1431 }
 0x339   : > { %v1207_v0 = vpop.f32.mrf.mxu2 }
 0x33a   : > { %v1208_v2 = vadd.f32 %v1207_v0, %v1121_v39 }
 0x33c   : > { %v1220_v16 = vmax.f32 %v1208_v2, 0.0 }
 0x341   : > { %v1209_v3 = vpop.f32.mrf.mxu2 }
 0x342   : > { %v1210_v5 = vadd.f32 %v1209_v3, %v1126_v33 }
 0x344   : > { %v1223_v17 = vmax.f32 %v1210_v5, 0.0 }
 0x346   : > { %v1231_v21 = vpack.c.bf16 %v1223_v17, %v1220_v16 }
 0x348   : > { %v1264_v23 = vand.u32 %v1256_v43, %v1231_v21  ;;  %v1275_v32 = vpop.f32.mrf.mxu0 }
 0x349   : > { %v1276_v63 = vadd.f32 %v1275_v32, %v1237_v35 }
 0x34a   : > { %1300 = vmatpush.bf16.msra.mxu2 %v1264_v23 }
 0x34b   : > { %v1665_v27 = vmul.f32 -1.442695, %v1276_v63 }
 0x34e   : > { %1301 = vmatpush.bf16.msra.mxu2 %v1228_v15 }
 0x350   : > { %v1277_v62 = vpop.f32.mrf.mxu0 }
 0x351   : > { %1664 = vmatmul.msk.bf16.vlgmr.msra.gmra.mxu2 %vm1249_vm7, %v1661_v45  ;;  %v1278_v38 = vadd.f32 %v1277_v62, %v1242_v1 }
 0x353   : > { %v1668_v40 = vmul.f32 -1.442695, %v1278_v38 }
 0x388   : > { %v1289_v31 = vpop.f32.mrf.mxu1 }
 0x389   : > { %v1290_v9 = vadd.f32 %v1289_v31, %v1237_v35 }
 0x38b   : > { %v1666_v39 = vmul.f32 -1.442695, %v1290_v9  ;;  %v1427_v9 = vpop.permute.xlu0 %1426 }
 0x390   : > { %v1291_v60 = vpop.f32.mrf.mxu1 }
 0x391   : > { %v1292_v34 = vadd.f32 %v1291_v60, %v1242_v1 }
 0x393   : > { %v1669_v36 = vmul.f32 -1.442695, %v1292_v34 }
 0x395   : > { %1730 = vpow2.f32 %v1669_v36 }
 0x396   : > { %1732 = vpow2.f32 %v1666_v39 }
 0x397   : > { %1734 = vpow2.f32 %v1668_v40 }
 0x398   : > { %1736 = vpow2.f32 %v1665_v27 }
 0x39b   : > { %v1731_v33 = vpop.eup %1730 }
 0x39c   : > { %v1330_v42 = vadd.f32 1.0, %v1731_v33  ;;  %v1733_v44 = vpop.eup %1732 }
 0x39d   : > { %v1735_v12 = vpop.eup %1734  ;;  %v2329_v46 = vadd.f32 1.0, %v1733_v44 }
 0x39e   : > { %1738 = vrcp.f32 %v1330_v42  ;;  %v1737_v28 = vpop.eup %1736  ;;  %v2331_v19 = vadd.f32 1.0, %v1735_v12  ;;  %v1403_v57 = vand.u32 2147483648, %v1330_v42  ;;  %vm1397_vm9 = vweird.f32 %v1330_v42 }
 0x39f   : > { %v2333_v14 = vadd.f32 1.0, %v1737_v28  ;;  %1740 = vrcp.f32 %v2329_v46  ;;  %v1401_v10 = vand.u32 2147483647, %v1330_v42  ;;  %v1358_v2 = vand.u32 2147483648, %v2329_v46 }
 0x3a0   : > { %1742 = vrcp.f32 %v2331_v19  ;;  %v1388_v25 = vand.u32 2147483648, %v2331_v19  ;;  %v1404_v37 = vor.u32 1.1754944e-38, %v1403_v57  ;;  %vm1352_vm14 = vweird.f32 %v2329_v46 }
 0x3a1   : > { %1744 = vrcp.f32 %v2333_v14  ;;  %vm1402_vm13 = vcmp.eq.f32.partialorder %v1401_v10, 8.507059e+37  ;;  %v1356_v5 = vand.u32 2147483647, %v2329_v46  ;;  %vm1382_vm15 = vweird.f32 %v2331_v19 }
 0x3a2   : > { %v1386_v17 = vand.u32 2147483647, %v2331_v19  ;;  %v1359_v31 = vor.u32 1.1754944e-38, %v1358_v2  ;;  %v1343_v34 = vand.u32 2147483648, %v2333_v14  ;;  %vm1337_vm7 = vweird.f32 %v2333_v14 }
 0x3a3   : > { %vm1357_vm5 = vcmp.eq.f32.partialorder %v1356_v5, 8.507059e+37  ;;  %v1468_v5 = vpop.permute.xlu1 %1467 }
 0x3a4   : > { %v1739_v49 = vpop.eup %1738  ;;  %vm1387_vm6 = vcmp.eq.f32.partialorder %v1386_v17, 8.507059e+37  ;;  %v1344_v33 = vor.u32 1.1754944e-38, %v1343_v34  ;;  %v1470_v20 = vperm.slane %v1468_v5, 0 }
 0x3a5   : > { %v1393_v51 = vmul.f32 %v1739_v49, %v1330_v42  ;;  %v1741_v43 = vpop.eup %1740  ;;  %vm1398_vm8 = vweird.f32 %v1739_v49 }
 0x3a6   : > { %v1743_v4 = vpop.eup %1742  ;;  %v1348_v47 = vmul.f32 %v1741_v43, %v2329_v46  ;;  %vm2344_vm10 = vmor %vm1397_vm9, %vm1398_vm8  ;;  %vm1353_vm11 = vweird.f32 %v1741_v43 }
 0x3a7   : > { %v1394_v52 = vsub.f32 1.0, %v1393_v51  ;;  %v2338_v53 = vpop.eup %1744  ;;  %v1378_v18 = vmul.f32 %v1743_v4, %v2331_v19  ;;  %vm1383_vm12 = vweird.f32 %v1743_v4  ;;  %vm2357_vm0 = vmor %vm1352_vm14, %vm1353_vm11 }
 0x3a8   : > { %v1333_v11 = vmul.f32 %v2338_v53, %v2333_v14  ;;  %v1349_v45 = vsub.f32 1.0, %v1348_v47  ;;  %vm2363_vm2 = vmor %vm1382_vm15, %vm1383_vm12  ;;  %vm1338_vm4 = vweird.f32 %v2338_v53 }
 0x3a9   : > { %v1395_v8 = vmul.f32 %v1739_v49, %v1394_v52  ;;  %v1379_v54 = vsub.f32 1.0, %v1378_v18  ;;  %vm1339_vm8 = vmor %vm1337_vm7, %vm1338_vm4 }
 0x3aa   : > { %v1334_v6 = vsub.f32 1.0, %v1333_v11  ;;  %v1350_v56 = vmul.f32 %v1741_v43, %v1349_v45 }
 0x3ab   : > { %v1396_v41 = vadd.f32 %v1739_v49, %v1395_v8  ;;  %v1380_v48 = vmul.f32 %v1743_v4, %v1379_v54 }
 0x3ac   : > { %v1335_v59 = vmul.f32 %v2338_v53, %v1334_v6  ;;  %v1351_v29 = vadd.f32 %v1741_v43, %v1350_v56 }
 0x3ad   : > { %v1400_v24 = vsel %vm2344_vm10, %v1739_v49, %v1396_v41  ;;  %v1381_v0 = vadd.f32 %v1743_v4, %v1380_v48 }
 0x3ae   : > { %v1405_v7 = vsel %vm1402_vm13, %v1404_v37, %v1400_v24  ;;  %v1355_v26 = vsel %vm2357_vm0, %v1741_v43, %v1351_v29  ;;  %v1336_v60 = vadd.f32 %v2338_v53, %v1335_v59 }
 0x3af   : > { %v1385_v15 = vsel %vm2363_vm2, %v1743_v4, %v1381_v0  ;;  %v1438_v32 = vmul.f32 %v2361_v22, %v1405_v7  ;;  %v1360_v62 = vsel %vm1357_vm5, %v1359_v31, %v1355_v26 }
 0x3b0   : > { %v1340_v39 = vsel %vm1339_vm8, %v2338_v53, %v1336_v60  ;;  %v1435_v40 = vmul.f32 %v1427_v9, %v1360_v62  ;;  %v1485_v62 = vlaneseq }
 0x3b1   : > { %v1448_v38 = vsel %vm973_vm1, %v1438_v32, 0.0 }
 0x3b2   : > { %v1449_v12 = vadd.f32 %v1448_v38, %v1435_v40  ;;  %vm1487_vm4 = vcmp.lt.s32.totalorder %v1485_v62, 384 }
 0x3b4   : > { %v1450_v51 = vrot.slane %v1449_v12, 4 }
 0x3b6   : > { %v1451_v53 = vadd.f32 %v1450_v51, %v1449_v12 }
 0x3b8   : > { %v1452_v54 = vrot.slane %v1451_v53, 2 }
 0x3ba   : > { %v1453_v13 = vadd.f32 %v1452_v54, %v1451_v53 }
 0x3d4   : > { %v1303_v30 = vpop.f32.mrf.mxu2 }
 0x3d5   : > { %v1304_v50 = vadd.f32 %v1303_v30, %v1237_v35  ;;  %v1341_v35 = vand.u32 2147483647, %v2333_v14 }
 0x3d7   : > { %v1667_v55 = vmul.f32 -1.442695, %v1304_v50  ;;  %vm1342_vm9 = vcmp.eq.f32.partialorder %v1341_v35, 8.507059e+37 }
 0x3d8   : > { %v1345_v46 = vsel %vm1342_vm9, %v1344_v33, %v1340_v39 }
 0x3d9   : > { %1746 = vpow2.f32 %v1667_v55  ;;  %v1434_v49 = vmul.f32 %v1427_v9, %v1345_v46 }
 0x3dc   : > { %v1305_v58 = vpop.f32.mrf.mxu2 }
 0x3dd   : > { %v1306_v61 = vadd.f32 %v1305_v58, %v1242_v1  ;;  %v1389_v1 = vor.u32 1.1754944e-38, %v1388_v25 }
 0x3df   : > { %v1747_v3 = vpop.eup %1746  ;;  %v1670_v16 = vmul.f32 -1.442695, %v1306_v61  ;;  %v1390_v36 = vsel %vm1387_vm6, %v1389_v1, %v1385_v15  ;;  %v1454_v61 = vrot.slane %v1453_v13, 1 }
 0x3e0   : > { %v1328_v21 = vadd.f32 1.0, %v1747_v3  ;;  %v1437_v42 = vmul.f32 %v2361_v22, %v1390_v36 }
 0x3e1   : > { %1748 = vpow2.f32 %v1670_v16  ;;  %v1455_v16 = vadd.f32 %v1454_v61, %v1453_v13 }
 0x3e2   : > { %1750 = vrcp.f32 %v1328_v21  ;;  %v1440_v14 = vsel %vm973_vm1, %v1437_v42, 0.0  ;;  %v1373_v8 = vand.u32 2147483648, %v1328_v21  ;;  %vm1367_vm11 = vweird.f32 %v1328_v21 }
 0x3e3   : > { %v1441_v4 = vadd.f32 %v1440_v14, %v1434_v49  ;;  %v1371_v45 = vand.u32 2147483647, %v1328_v21  ;;  %v1472_v26 = vadd.f32 %v1470_v20, %v1455_v16 }
 0x3e4   : > { %v1374_v57 = vor.u32 1.1754944e-38, %v1373_v8 }
 0x3e5   : > { %v1442_v11 = vrot.slane %v1441_v4, 4  ;;  %vm1372_vm15 = vcmp.eq.f32.partialorder %v1371_v45, 8.507059e+37 }
 0x3e7   : > { %v1749_v63 = vpop.eup %1748  ;;  %v1443_v56 = vadd.f32 %v1442_v11, %v1441_v4 }
 0x3e8   : > { %v1751_v27 = vpop.eup %1750  ;;  %v1331_v44 = vadd.f32 1.0, %v1749_v63 }
 0x3e9   : > { %v1363_v28 = vmul.f32 %v1751_v27, %v1328_v21  ;;  %vm1368_vm10 = vweird.f32 %v1751_v27  ;;  %v1444_v58 = vrot.slane %v1443_v56, 2 }
 0x3ea   : > { %1752 = vrcp.f32 %v1331_v44  ;;  %v1418_v50 = vand.u32 2147483648, %v1331_v44  ;;  %vm1369_vm12 = vmor %vm1367_vm11, %vm1368_vm10  ;;  %v1416_v6 = vand.u32 2147483647, %v1331_v44  ;;  %vm1412_vm14 = vweird.f32 %v1331_v44 }
 0x3eb   : > { %v1364_v19 = vsub.f32 1.0, %v1363_v28  ;;  %v1445_v3 = vadd.f32 %v1444_v58, %v1443_v56 }
 0x3ec   : > { %v1419_v10 = vor.u32 1.1754944e-38, %v1418_v50  ;;  %vm1417_vm2 = vcmp.eq.f32.partialorder %v1416_v6, 8.507059e+37 }
 0x3ed   : > { %v1365_v43 = vmul.f32 %v1751_v27, %v1364_v19  ;;  %v1446_v21 = vrot.slane %v1445_v3, 1 }
 0x3ef   : > { %v1366_v18 = vadd.f32 %v1751_v27, %v1365_v43  ;;  %v1447_v31 = vadd.f32 %v1446_v21, %v1445_v3 }
 0x3f0   : > { %v1753_v52 = vpop.eup %1752 }
 0x3f1   : > { %v1408_v47 = vmul.f32 %v1753_v52, %v1331_v44  ;;  %vm1413_vm13 = vweird.f32 %v1753_v52  ;;  %v1370_v41 = vsel %vm1369_vm12, %v1751_v27, %v1366_v18  ;;  %v1471_v1 = vadd.f32 %v1470_v20, %v1447_v31 }
 0x3f2   : > { %vm1414_vm0 = vmor %vm1412_vm14, %vm1413_vm13  ;;  %v1375_v59 = vsel %vm1372_vm15, %v1374_v57, %v1370_v41 }
 0x3f3   : > { %v1409_v30 = vsub.f32 1.0, %v1408_v47  ;;  %v1436_v37 = vmul.f32 %v1427_v9, %v1375_v59  ;;  %v1474_v9 = vmax.f32 %v1471_v1, 0.0 }
 0x3f5   : > { %v1410_v55 = vmul.f32 %v1753_v52, %v1409_v30 }
 0x3f7   : > { %v1411_v48 = vadd.f32 %v1753_v52, %v1410_v55 }
 0x3f9   : > { %v1415_v25 = vsel %vm1414_vm0, %v1753_v52, %v1411_v48 }
 0x3fa   : > { %v1420_v24 = vsel %vm1417_vm2, %v1419_v10, %v1415_v25 }
 0x3fb   : > { %v1439_v29 = vmul.f32 %v2361_v22, %v1420_v24  ;;  %v1475_v22 = vmax.f32 %v1472_v26, 0.0 }
 0x3fd   : > { %v1456_v0 = vsel %vm973_vm1, %v1439_v29, 0.0  ;;  %v1480_v35 = vrot.slane %v1475_v22, 7 }
 0x3fe   : > { %v1457_v2 = vadd.f32 %v1456_v0, %v1436_v37 }
 0x3ff   : > { %v1482_v63 = vsel %vm1145_vm3, %v1474_v9, %v1480_v35 }
 0x400   : > { %v1458_v7 = vrot.slane %v1457_v2, 4 }
 0x402   : > { %v1459_v17 = vadd.f32 %v1458_v7, %v1457_v2 }
 0x404   : > { %v1460_v23 = vrot.slane %v1459_v17, 2 }
 0x406   : > { %v1461_v15 = vadd.f32 %v1460_v23, %v1459_v17 }
 0x408   : > { %v1462_v32 = vrot.slane %v1461_v15, 1 }
 0x40a   : > { %v1463_v60 = vadd.f32 %v1462_v32, %v1461_v15 }
 0x40c   : > { %v1473_v34 = vadd.f32 %v1470_v20, %v1463_v60 }
 0x40e   : > { %v1476_v36 = vmax.f32 %v1473_v34, 0.0 }
 0x40f   : > { %1497 = sbr.rel (!%p1933_p5) target bundleno = 1085 (0x43d), region = 68 }
 0x410   : > { %v1481_v38 = vrot.slane %v1476_v36, 6 }
 0x412   : > { %v1483_v39 = vsel %vm973_vm1, %v1482_v63, %v1481_v38 }
 0x413   : > { %1489 = vst.msk [vmem:[%s394_s23] sm:$0x7] %vm1487_vm4, %v1483_v39 }
 0x414   : > { %s1498_s26 = smul.u32 3, %s1916_s10 }
 0x416   : > { %s1499_s30 = ssub.s32 5, %s1498_s26 }
 0x417   : > { %p1500_p11 = scmp.lt.s32.totalorder %s1499_s30, 3 }
 0x419   : > { %s2480_s30 = smov (!%p1500_p11, %s1499_s30), 3 }
 0x41a   : > { %s1502_s12 = ssub.s32 3, %s2480_s30 }
 0x41b   : > { %s1503_s15 = sshll.u32 %s1502_s12, 4 }
 0x41c   : > { %1504 = vsyncadd %s2389_s25, %s1503_s15  ;;  %p1671_p12 = scmp.ne.s32.totalorder %s2480_s30, 0  ;;  %s1506_s28 = scalar_lea.hbm %s2455_s11, %s1498_s26 }
 0x41d   : > { %s2458_s16 = sshll.u32 %s2480_s30, 4  ;;  %s2403_s17 = sshll.u32 %s394_s23, 4  ;;  %s2457_s17 = int_to_ptr.vmem [resolvable:$true] %s2403_s17 }
 0x41e   : > { %2469 = sst [smem:[#allocation6_spill]] %s2403_s17  ;;  %s1510_s10 = sshll.u32 %s1506_s28, 4  ;;  %s1511_s10 = int_to_ptr.hbm [resolvable:$true] %s1510_s10 }
 0x41f   : > { %s1754_s18 = sshra.s32 %s2457_s17, 4  ;;  %s1756_s12 = sshrl.u32 %s2458_s16, 4  ;;  %s1755_s18 = int_to_ptr.vmem [resolvable:$true] %s1754_s18 }
 0x420   : > { %s1761_s15 = scalar_lea.vmem %s1755_s18, %s1756_s12  ;;  %s1831_s13 = smov [#allocation3]  }
 0x421   : > { %p1762_p13 = scmp.ne.s32.totalorder %s1755_s18, %s1761_s15  ;;  %s1765_s26 = scalar_lea.vmem %s1831_s13, 6 }
 0x422   : > { %p1767_p2 = scmp.lt.s32.totalorder %s1765_s26, %s1761_s15 }
 0x423   : > { %p1763_p0 = pnand %p1762_p13, %p1671_p12 }
 0x425   : > { %p1764_p1 = pneg %p1763_p0 }
 0x427   : > { %p1769_p3 = pnand %p1767_p2, %p1764_p1 }
 0x429   : > { %1772 = shalt.err (!%p1769_p3)
}
 0x42a   : > { %s1773_s23 = sshra.s32 %s1511_s10, 4  ;;  %s1784_s18 = scalar_lea.hbm %s2455_s11, 5  ;;  %s1774_s23 = int_to_ptr.hbm [resolvable:$true] %s1773_s23 }
 0x42b   : > { %s1780_s14 = scalar_lea.hbm %s1774_s23, %s1756_s12  ;;  %p1785_p8 = scmp.lt.s32.totalorder %s1774_s23, %s2455_s11 }
 0x42c   : > { %p1781_p4 = scmp.ne.s32.totalorder %s1774_s23, %s1780_s14  ;;  %p1786_p9 = scmp.lt.s32.totalorder %s1784_s18, %s1780_s14 }
 0x42e   : > { %p1782_p5 = pnand %p1781_p4, %p1671_p12  ;;  %p1787_p10 = por %p1786_p9, %p1785_p8 }
 0x430   : > { %p1783_p7 = pneg %p1782_p5 }
 0x432   : > { %p1788_p11 = pnand %p1787_p10, %p1783_p7 }
 0x434   : > { %1791 = shalt.err (!%p1788_p11)
}
 0x435   : > { %s2470_s12 = sshll.u32 %s2480_s30, 4  ;;  %s2471_s15 = sld [smem:[#allocation6_spill]] }
 0x43b   : > { %s2472_s13 = int_to_ptr.vmem [resolvable:$true] %s2471_s15 }
 0x43c   : > { %1513 = dma.vmem_to_hbm [thread:$0]  (%p1671_p12), %s2472_s13, %s2470_s12, %s1511_s10, %s2389_s25  }
 0x43d PF: > { %p1692_p13 = scmp.ge.s32.totalorder %s1827_s22, 2  ;;  %s1522_s0 = sand.u32 1, %s1815_s19  }
 0x43e   : > { %s1523_s16 = scalar_lea.sflag [#allocation4], %s1522_s0 }
 0x43f   : > { %p1689_p0 = pnand %p1692_p13, %p1937_p6 }
 0x441   : > { %p1690_p1 = pneg %p1689_p0 }
 0x443   : > { %1810 = dma.done.wait (%p1690_p1), %s1523_s16, 48  }
 0x444   : > { %1812 = vsyncadd (%p1690_p1), %s1523_s16, 4294967248  ;;  %p23_p2 = scmp.ge.s32.totalorder %s1920_s24, 4   ;;  %s2473_s19 = smov %s1819_s20 }
 0x445   : > { %s2474_s20 = smov %s1823_s21  ;;  %s2475_s21 = smov %s1931_s27 }
 0x446   : > { %s2476_s22 = smov %s1920_s24  ;;  %25 = sbr.rel (!%p23_p2) target bundleno = 6 (0x6), region = 99 }
 0x44b   :  { %1529 = vsyncpa [#allocation4], 1 }
 0x44c   :  { %1531 = vsyncpa [#allocation4 + $0x1], 1 }

</bundles_post_ra>
